<compile_context>
chip_gen: v7x
topology: tpu7x:2x2x1
jax: 0.10.0
libtpu: 0.0.40
codegen_flags: <defaults>
</compile_context>

<pallas_src>
import math
import functools

import jax
import jax.numpy as jnp
from jax.experimental import pallas as pl
from jax.experimental.pallas import tpu as pltpu


@functools.lru_cache(maxsize=None)
def _vmem_limit_bytes():
    """Generation-aware scoped-VMEM cap (~half of physical, <= 64 MiB)."""
    cap = 128 * 1024 * 1024
    try:
        info = pltpu.get_tpu_info()
        cap = int(getattr(info, "vmem_capacity_bytes", cap))
    except Exception:
        pass
    return int(min(max(cap // 2, 16 * 1024 * 1024), 64 * 1024 * 1024))


def _pick_tile(n, candidates):
    for c in candidates:
        if n >= c and n % c == 0:
            return c
    return n


# ---------------------------------------------------------------------------
# Kernel 1: fused QKV + multi-head attention + out-proj + residual + LayerNorm
#           grid = (batch, query-tiles)
# ---------------------------------------------------------------------------
def _attn_layer_kernel(x_ref, bias_ref, wqkv_ref, bqkv_ref, wo_ref, bo_ref,
                       g_ref, bn_ref,
                       y_ref, attn_ref,
                       q_scr, k_scr, v_scr,
                       *, n_qk, n_v, d_k, d_v, n_heads, q_tile, ln_eps):
    qt = pl.program_id(1)

    # Fused full-width QKV projection once per batch element (qt == 0).
    # 1/sqrt(d_k) is pre-folded into the Q columns of wqkv/bqkv.
    @pl.when(qt == 0)
    def _():
        x_bf = x_ref[0]                                              # (S, d_model) bf16
        qkv = jnp.dot(x_bf, wqkv_ref[...],
                      preferred_element_type=jnp.float32) + bqkv_ref[...]
        q_scr[...] = qkv[:, :n_qk].astype(jnp.bfloat16)
        k_scr[...] = qkv[:, n_qk:2 * n_qk].astype(jnp.bfloat16)
        v_scr[...] = qkv[:, 2 * n_qk:].astype(jnp.bfloat16)

    q0 = pl.multiple_of(qt * q_tile, q_tile)
    q_rows = q_scr[pl.ds(q0, q_tile), :]                             # (tq, H*d_k) bf16
    k_all = k_scr[...]                                               # (S,  H*d_k) bf16
    v_all = v_scr[...]                                               # (S,  H*d_v) bf16
    bias = bias_ref[0]                                               # (1, S) f32 additive pad bias

    # Unrolled head loop: only one (tq, S) score/attn tile live at a time.
    ctx_parts = []
    for h in range(n_heads):
        qh = q_rows[:, h * d_k:(h + 1) * d_k]
        kh = k_all[:, h * d_k:(h + 1) * d_k]
        vh = v_all[:, h * d_v:(h + 1) * d_v]
        scores = jnp.einsum('qd,kd->qk', qh, kh,
                            preferred_element_type=jnp.float32) + bias   # (tq, S) f32
        m = jnp.max(scores, axis=-1, keepdims=True)
        e = jnp.exp(scores - m)
        p = e * pl.reciprocal(jnp.sum(e, axis=-1, keepdims=True), approx=True)
        attn_ref[0, h] = p.astype(attn_ref.dtype)                    # bf16 writeback
        ctx_parts.append(jnp.dot(p.astype(jnp.bfloat16), vh,
                                 preferred_element_type=jnp.float32))

    # Single dense output projection over the concatenated heads.
    ctx = jnp.concatenate(ctx_parts, axis=-1).astype(jnp.bfloat16)   # (tq, H*d_v)
    out = jnp.dot(ctx, wo_ref[...],
                  preferred_element_type=jnp.float32) + bo_ref[...]  # (tq, d_model) f32

    # Residual (residual is Q == x) + LayerNorm in f32.
    res = out + x_ref[0, pl.ds(q0, q_tile), :].astype(jnp.float32)
    mean = jnp.mean(res, axis=-1, keepdims=True)
    var = jnp.mean((res - mean) ** 2, axis=-1, keepdims=True)
    ln = (res - mean) * jax.lax.rsqrt(var + jnp.float32(ln_eps))
    y_ref[0] = (ln * g_ref[...] + bn_ref[...]).astype(y_ref.dtype)


def _attention_layer(x, bias, p, *, d_k, d_v, n_heads, ln_eps=1e-5):
    B, S, d_model = x.shape
    n_qk = n_heads * d_k
    n_v = n_heads * d_v
    q_tile = _pick_tile(S, (256, 128))

    kernel = functools.partial(_attn_layer_kernel, n_qk=n_qk, n_v=n_v,
                               d_k=d_k, d_v=d_v, n_heads=n_heads,
                               q_tile=q_tile, ln_eps=ln_eps)

    def const(arr):
        return pl.BlockSpec(arr.shape, lambda b, qt, _nd=arr.ndim: (0,) * _nd)

    y, attn = pl.pallas_call(
        kernel,
        out_shape=(
            jax.ShapeDtypeStruct((B, S, d_model), jnp.bfloat16),
            jax.ShapeDtypeStruct((B, n_heads, S, S), jnp.bfloat16),
        ),
        grid_spec=pltpu.PrefetchScalarGridSpec(
            num_scalar_prefetch=0,
            grid=(B, S // q_tile),
            in_specs=[
                pl.BlockSpec((1, S, d_model), lambda b, qt: (b, 0, 0)),  # x (fetched once per batch)
                pl.BlockSpec((1, 1, S), lambda b, qt: (b, 0, 0)),        # additive pad-mask bias
                const(p['wqkv']), const(p['bqkv']),
                const(p['wo']), const(p['bo']),
                const(p['ln1_g']), const(p['ln1_b']),
            ],
            out_specs=[
                pl.BlockSpec((1, q_tile, d_model), lambda b, qt: (b, qt, 0)),
                pl.BlockSpec((1, n_heads, q_tile, S), lambda b, qt: (b, 0, qt, 0)),
            ],
            scratch_shapes=[
                pltpu.VMEM((S, n_qk), jnp.bfloat16),   # Q (scaled, biased)
                pltpu.VMEM((S, n_qk), jnp.bfloat16),   # K
                pltpu.VMEM((S, n_v), jnp.bfloat16),    # V
            ]),
        compiler_params=pltpu.CompilerParams(
            # qt must stay "arbitrary": the per-batch QKV scratch is computed
            # at qt == 0 and reused across query tiles.
            dimension_semantics=("parallel", "arbitrary"),
            vmem_limit_bytes=_vmem_limit_bytes()),
    )(x, bias, p['wqkv'], p['bqkv'], p['wo'], p['bo'], p['ln1_g'], p['ln1_b'])
    return y, attn


# ---------------------------------------------------------------------------
# Kernel 2: position-wise feed-forward + residual + LayerNorm, grid = (B, S-tiles)
# ---------------------------------------------------------------------------
def _ffn_kernel(x_ref, w1_ref, b1_ref, w2_ref, b2_ref, g_ref, bn_ref, y_ref,
                *, ln_eps):
    x_bf = x_ref[0]                                                  # (ts, d_model) bf16
    hidden = jnp.dot(x_bf, w1_ref[...],
                     preferred_element_type=jnp.float32) + b1_ref[...]
    c = jnp.float32(math.sqrt(2.0 / math.pi))
    act = 0.5 * hidden * (1.0 + jnp.tanh(c * (hidden + 0.044715 * hidden * hidden * hidden)))
    out = jnp.dot(act.astype(jnp.bfloat16), w2_ref[...],
                  preferred_element_type=jnp.float32) + b2_ref[...]
    res = out + x_bf.astype(jnp.float32)
    mean = jnp.mean(res, axis=-1, keepdims=True)
    var = jnp.mean((res - mean) ** 2, axis=-1, keepdims=True)
    ln = (res - mean) * jax.lax.rsqrt(var + jnp.float32(ln_eps))
    y_ref[0] = (ln * g_ref[...] + bn_ref[...]).astype(y_ref.dtype)


def _ffn_layer(x, p, *, ln_eps=1e-5):
    B, S, d_model = x.shape
    ts = _pick_tile(S, (512, 256, 128))

    kernel = functools.partial(_ffn_kernel, ln_eps=ln_eps)

    def const(arr):
        return pl.BlockSpec(arr.shape, lambda b, s, _nd=arr.ndim: (0,) * _nd)

    y = pl.pallas_call(
        kernel,
        out_shape=jax.ShapeDtypeStruct((B, S, d_model), jnp.bfloat16),
        grid_spec=pltpu.PrefetchScalarGridSpec(
            num_scalar_prefetch=0,
            grid=(B, S // ts),
            in_specs=[
                pl.BlockSpec((1, ts, d_model), lambda b, s: (b, s, 0)),
                const(p['w1']), const(p['b1']),
                const(p['w2']), const(p['b2']),
                const(p['ln2_g']), const(p['ln2_b']),
            ],
            out_specs=pl.BlockSpec((1, ts, d_model), lambda b, s: (b, s, 0))),
        compiler_params=pltpu.CompilerParams(
            dimension_semantics=("parallel", "parallel"),
            vmem_limit_bytes=_vmem_limit_bytes()),
    )(x, p['w1'], p['b1'], p['w2'], p['b2'], p['ln2_g'], p['ln2_b'])
    return y


# ---------------------------------------------------------------------------
# One-time weight packing (hoisted out of the forward/layer loop)
# ---------------------------------------------------------------------------
def pack_encoder_params(layers, *, d_k, d_v, n_heads):
    del d_v, n_heads  # head layout is already column-contiguous in the linear weights
    scale = jnp.float32(1.0 / math.sqrt(d_k))
    packed = []
    for p in layers:
        wqkv = jnp.concatenate([p['wq'] * scale, p['wk'], p['wv']], axis=1)
        bqkv = jnp.concatenate([p['bq'] * scale, p['bk'], p['bv']]).reshape(1, -1)
        packed.append(dict(
            wqkv=wqkv.astype(jnp.bfloat16),
            bqkv=bqkv.astype(jnp.float32),
            wo=p['wo'].astype(jnp.bfloat16),
            bo=p['bo'].reshape(1, -1).astype(jnp.float32),
            ln1_g=p['ln1_g'].reshape(1, -1).astype(jnp.float32),
            ln1_b=p['ln1_b'].reshape(1, -1).astype(jnp.float32),
            w1=p['w1'].astype(jnp.bfloat16),
            b1=p['b1'].reshape(1, -1).astype(jnp.float32),
            w2=p['w2'].astype(jnp.bfloat16),
            b2=p['b2'].reshape(1, -1).astype(jnp.float32),
            ln2_g=p['ln2_g'].reshape(1, -1).astype(jnp.float32),
            ln2_b=p['ln2_b'].reshape(1, -1).astype(jnp.float32)))
    return packed


# ---------------------------------------------------------------------------
# Encoder forward (embedding + PE in wrapper, layers in Pallas)
# ---------------------------------------------------------------------------
def positional_encoding(max_len, d_model):
    position = jnp.arange(max_len, dtype=jnp.float32)[:, None]
    div_term = jnp.exp(jnp.arange(0, d_model, 2, dtype=jnp.float32)
                       * (-math.log(10000.0) / d_model))
    pe = jnp.zeros((max_len, d_model), jnp.float32)
    pe = pe.at[:, 0::2].set(jnp.sin(position * div_term))
    pe = pe.at[:, 1::2].set(jnp.cos(position * div_term))
    return pe


def encoder_forward(ids, emb, pe, packed_layers, *, pad_index, d_k, d_v, n_heads):
    B, S = ids.shape
    # TODO(synk): embedding-table gather + positional-encoding add are left to XLA
    # (data-dependent row gather; no clean rectangular BlockSpec expression).
    x = (jnp.take(emb, ids, axis=0) + pe[:S][None, :, :]).astype(jnp.bfloat16)
    # get_attn_pad_mask masks key positions equal to pad_index -> additive bias.
    bias = jnp.where(ids == pad_index, -1000000000.0, 0.0).astype(jnp.float32)
    bias = bias.reshape(B, 1, S)

    attns = []
    for p in packed_layers:
        x, attn = _attention_layer(x, bias, p, d_k=d_k, d_v=d_v, n_heads=n_heads)
        x = _ffn_layer(x, p)
        attns.append(attn)
    enc_self_attns = jnp.stack(attns, axis=1)            # (B, n_layers, H, S, S) bf16
    return x.astype(jnp.float32), enc_self_attns


# ---------------------------------------------------------------------------
# Pure-JAX f32 reference mirroring the PyTorch module
# ---------------------------------------------------------------------------
def reference_encoder(ids, emb, pe, layers, *, pad_index, d_k, d_v, n_heads,
                      ln_eps=1e-5):
    B, S = ids.shape
    x = emb[ids] + pe[:S][None, :, :]
    mask = jnp.broadcast_to((ids == pad_index)[:, None, :], (B, S, S))

    def layer_norm(v, g, b):
        mean = v.mean(-1, keepdims=True)
        var = ((v - mean) ** 2).mean(-1, keepdims=True)
        return (v - mean) / jnp.sqrt(var + ln_eps) * g + b

    attns = []
    for p in layers:
        q = (x @ p['wq'] + p['bq']).reshape(B, S, n_heads, d_k).transpose(0, 2, 1, 3)
        k = (x @ p['wk'] + p['bk']).reshape(B, S, n_heads, d_k).transpose(0, 2, 1, 3)
        v = (x @ p['wv'] + p['bv']).reshape(B, S, n_heads, d_v).transpose(0, 2, 1, 3)
        scores = jnp.einsum('bhqd,bhkd->bhqk', q, k) / math.sqrt(d_k)
        scores = jnp.where(mask[:, None], -1000000000.0, scores)
        attn = jax.nn.softmax(scores, axis=-1)
        ctx = jnp.einsum('bhqk,bhkd->bhqd', attn, v)
        ctx = ctx.transpose(0, 2, 1, 3).reshape(B, S, n_heads * d_v)
        out = ctx @ p['wo'] + p['bo']
        x1 = layer_norm(out + x, p['ln1_g'], p['ln1_b'])
        h = x1 @ p['w1'] + p['b1']
        g = 0.5 * h * (1.0 + jnp.tanh(math.sqrt(2.0 / math.pi) * (h + 0.044715 * h ** 3)))
        o = g @ p['w2'] + p['b2']
        x = layer_norm(o + x1, p['ln2_g'], p['ln2_b'])
        attns.append(attn)
    return x, jnp.stack(attns, axis=1)


# ---------------------------------------------------------------------------
if __name__ == "__main__":
    B, S = 2, 8
    vocab_size, d_model, d_ff = 64, 32, 64
    d_k = d_v = 8
    n_heads, n_layers = 4, 2
    pad_index = 0

    key = jax.random.PRNGKey(0)
    k_emb, k_ids, k_layers = jax.random.split(key, 3)
    emb = jax.random.normal(k_emb, (vocab_size, d_model), jnp.float32)
    pe = positional_encoding(64, d_model)

    def linear_init(k, fan_in, fan_out):
        kw, kb = jax.random.split(k)
        bound = 1.0 / math.sqrt(fan_in)
        w = jax.random.uniform(kw, (fan_in, fan_out), jnp.float32, -bound, bound)
        b = jax.random.uniform(kb, (fan_out,), jnp.float32, -bound, bound)
        return w, b

    layers = []
    for lk in jax.random.split(k_layers, n_layers):
        k1, k2, k3, k4, k5, k6 = jax.random.split(lk, 6)
        wq, bq = linear_init(k1, d_model, n_heads * d_k)
        wk, bk = linear_init(k2, d_model, n_heads * d_k)
        wv, bv = linear_init(k3, d_model, n_heads * d_v)
        wo, bo = linear_init(k4, n_heads * d_v, d_model)
        w1, b1 = linear_init(k5, d_model, d_ff)
        w2, b2 = linear_init(k6, d_ff, d_model)
        layers.append(dict(
            wq=wq, bq=bq, wk=wk, bk=bk, wv=wv, bv=bv, wo=wo, bo=bo,
            ln1_g=jnp.ones((d_model,), jnp.float32),
            ln1_b=jnp.zeros((d_model,), jnp.float32),
            w1=w1, b1=b1, w2=w2, b2=b2,
            ln2_g=jnp.ones((d_model,), jnp.float32),
            ln2_b=jnp.zeros((d_model,), jnp.float32)))

    ids = jax.random.randint(k_ids, (B, S), 1, vocab_size)
    ids = ids.at[:, -2:].set(pad_index)     # trailing pad tokens exercise the mask

    packed = pack_encoder_params(layers, d_k=d_k, d_v=d_v, n_heads=n_heads)

    out, attns = encoder_forward(ids, emb, pe, packed, pad_index=pad_index,
                                 d_k=d_k, d_v=d_v, n_heads=n_heads)
    jax.block_until_ready((out, attns))

    ref_out, ref_attns = reference_encoder(ids, emb, pe, layers, pad_index=pad_index,
                                           d_k=d_k, d_v=d_v, n_heads=n_heads)

    assert out.shape == (B, S, d_model)
    assert attns.shape == (B, n_layers, n_heads, S, S)
    # bf16 MXU inputs, bf16 inter-kernel activations and bf16 attn writeback
    # (f32 accumulation / softmax / LayerNorm) => relaxed tolerances vs the
    # pure-f32 reference.
    attns_f32 = attns.astype(jnp.float32)
    assert jnp.allclose(out, ref_out, atol=1e-1, rtol=1e-1), \
        float(jnp.max(jnp.abs(out - ref_out)))
    assert jnp.allclose(attns_f32, ref_attns, atol=4e-2, rtol=4e-2), \
        float(jnp.max(jnp.abs(attns_f32 - ref_attns)))

    print("KERNEL_OK")
</pallas_src>

<mosaic_0001>
module attributes {stable_mosaic.version = 11 : i64} {
  func.func @_attn_layer_kernel(%arg0: i32, %arg1: i32, %arg2: memref<1x8x32xbf16, #tpu.memory_space<vmem>>, %arg3: memref<1x1x8xf32, #tpu.memory_space<vmem>>, %arg4: memref<32x96xbf16, #tpu.memory_space<vmem>>, %arg5: memref<1x96xf32, #tpu.memory_space<vmem>>, %arg6: memref<32x32xbf16, #tpu.memory_space<vmem>>, %arg7: memref<1x32xf32, #tpu.memory_space<vmem>>, %arg8: memref<1x32xf32, #tpu.memory_space<vmem>>, %arg9: memref<1x32xf32, #tpu.memory_space<vmem>>, %arg10: memref<1x8x32xbf16, #tpu.memory_space<vmem>>, %arg11: memref<1x4x8x8xbf16, #tpu.memory_space<vmem>>, %arg12: memref<8x32xbf16, #tpu.memory_space<vmem>>, %arg13: memref<8x32xbf16, #tpu.memory_space<vmem>>, %arg14: memref<8x32xbf16, #tpu.memory_space<vmem>>) attributes {dimension_semantics = [#tpu.dimension_semantics<parallel>, #tpu.dimension_semantics<arbitrary>], iteration_bounds = array<i64: 2, 1>, scalar_prefetch = 0 : i64, scratch_operands = 3 : i64, tpu.core_type = #tpu.core_type<tc>, window_params = [{transform_indices = @transform_0, window_bounds = array<i64: 1, 8, 32>}, {transform_indices = @transform_1, window_bounds = array<i64: 1, 1, 8>}, {pipeline_mode = #tpu.pipeline_mode<synchronous>, transform_indices = @transform_2, window_bounds = array<i64: 32, 96>}, {pipeline_mode = #tpu.pipeline_mode<synchronous>, transform_indices = @transform_3, window_bounds = array<i64: 1, 96>}, {pipeline_mode = #tpu.pipeline_mode<synchronous>, transform_indices = @transform_4, window_bounds = array<i64: 32, 32>}, {pipeline_mode = #tpu.pipeline_mode<synchronous>, transform_indices = @transform_5, window_bounds = array<i64: 1, 32>}, {pipeline_mode = #tpu.pipeline_mode<synchronous>, transform_indices = @transform_6, window_bounds = array<i64: 1, 32>}, {pipeline_mode = #tpu.pipeline_mode<synchronous>, transform_indices = @transform_7, window_bounds = array<i64: 1, 32>}, {transform_indices = @transform_8, window_bounds = array<i64: 1, 8, 32>}, {transform_indices = @transform_9, window_bounds = array<i64: 1, 4, 8, 8>}]} {
    %c0_i32 = arith.constant 0 : i32
    %0 = arith.cmpi eq, %arg1, %c0_i32 : i32
    %1 = arith.extui %0 : i1 to i32
    %c0_i32_0 = arith.constant 0 : i32
    %2 = arith.cmpi ne, %1, %c0_i32_0 : i32
    scf.if %2 {
      %c0_55 = arith.constant 0 : index
      %c0_56 = arith.constant 0 : index
      %c0_57 = arith.constant 0 : index
      %139 = vector.load %arg2[%c0_55, %c0_56, %c0_57] : memref<1x8x32xbf16, #tpu.memory_space<vmem>>, vector<1x8x32xbf16>
      %140 = vector.shape_cast %139 : vector<1x8x32xbf16> to vector<8x32xbf16>
      %c0_58 = arith.constant 0 : index
      %c0_59 = arith.constant 0 : index
      %141 = vector.load %arg4[%c0_58, %c0_59] : memref<32x96xbf16, #tpu.memory_space<vmem>>, vector<32x96xbf16>
      %cst_60 = arith.constant dense<0.000000e+00> : vector<8x96xf32>
      %142 = tpu.matmul %140, %141, %cst_60 {dimension_numbers = #tpu.dot_dimension_numbers<[1], [0], [0], [1], [0, 0, 1, 1], [], []>} : vector<8x32xbf16>, vector<32x96xbf16>, vector<8x96xf32> -> vector<8x96xf32>
      %c0_61 = arith.constant 0 : index
      %c0_62 = arith.constant 0 : index
      %143 = vector.load %arg5[%c0_61, %c0_62] : memref<1x96xf32, #tpu.memory_space<vmem>>, vector<1x96xf32>
      %144 = vector.broadcast %143 : vector<1x96xf32> to vector<8x96xf32>
      %145 = arith.addf %142, %144 : vector<8x96xf32>
      %146 = vector.extract_strided_slice %145 {offsets = [0, 0], sizes = [8, 32], strides = [1, 1]} : vector<8x96xf32> to vector<8x32xf32>
      %147 = arith.truncf %146 : vector<8x32xf32> to vector<8x32xbf16>
      %c0_63 = arith.constant 0 : index
      %c0_64 = arith.constant 0 : index
      %148 = vector.load %arg12[%c0_63, %c0_64] : memref<8x32xbf16, #tpu.memory_space<vmem>>, vector<8x32xbf16>
      tpu.vector_store %arg12[%c0_63, %c0_64], %147 {strides = array<i32>} : memref<8x32xbf16, #tpu.memory_space<vmem>>, vector<8x32xbf16>,
      %149 = vector.extract_strided_slice %145 {offsets = [0, 32], sizes = [8, 32], strides = [1, 1]} : vector<8x96xf32> to vector<8x32xf32>
      %150 = arith.truncf %149 : vector<8x32xf32> to vector<8x32xbf16>
      %c0_65 = arith.constant 0 : index
      %c0_66 = arith.constant 0 : index
      %151 = vector.load %arg13[%c0_65, %c0_66] : memref<8x32xbf16, #tpu.memory_space<vmem>>, vector<8x32xbf16>
      tpu.vector_store %arg13[%c0_65, %c0_66], %150 {strides = array<i32>} : memref<8x32xbf16, #tpu.memory_space<vmem>>, vector<8x32xbf16>,
      %152 = vector.extract_strided_slice %145 {offsets = [0, 64], sizes = [8, 32], strides = [1, 1]} : vector<8x96xf32> to vector<8x32xf32>
      %153 = arith.truncf %152 : vector<8x32xf32> to vector<8x32xbf16>
      %c0_67 = arith.constant 0 : index
      %c0_68 = arith.constant 0 : index
      %154 = vector.load %arg14[%c0_67, %c0_68] : memref<8x32xbf16, #tpu.memory_space<vmem>>, vector<8x32xbf16>
      tpu.vector_store %arg14[%c0_67, %c0_68], %153 {strides = array<i32>} : memref<8x32xbf16, #tpu.memory_space<vmem>>, vector<8x32xbf16>,
    } else {
    }
    %c8_i32 = arith.constant 8 : i32
    %3 = arith.muli %arg1, %c8_i32 : i32
    %4 = tpu.assume_multiple %3, 8 : i32
    %5 = arith.index_cast %4 : i32 to index
    %c0 = arith.constant 0 : index
    %6 = vector.load %arg12[%5, %c0] : memref<8x32xbf16, #tpu.memory_space<vmem>>, vector<8x32xbf16>
    %c0_1 = arith.constant 0 : index
    %c0_2 = arith.constant 0 : index
    %7 = vector.load %arg13[%c0_1, %c0_2] : memref<8x32xbf16, #tpu.memory_space<vmem>>, vector<8x32xbf16>
    %c0_3 = arith.constant 0 : index
    %c0_4 = arith.constant 0 : index
    %8 = vector.load %arg14[%c0_3, %c0_4] : memref<8x32xbf16, #tpu.memory_space<vmem>>, vector<8x32xbf16>
    %c0_5 = arith.constant 0 : index
    %c0_6 = arith.constant 0 : index
    %c0_7 = arith.constant 0 : index
    %9 = vector.load %arg3[%c0_5, %c0_6, %c0_7] : memref<1x1x8xf32, #tpu.memory_space<vmem>>, vector<1x1x8xf32>
    %10 = vector.shape_cast %9 : vector<1x1x8xf32> to vector<1x8xf32>
    %11 = vector.extract_strided_slice %6 {offsets = [0, 0], sizes = [8, 8], strides = [1, 1]} : vector<8x32xbf16> to vector<8x8xbf16>
    %12 = vector.extract_strided_slice %7 {offsets = [0, 0], sizes = [8, 8], strides = [1, 1]} : vector<8x32xbf16> to vector<8x8xbf16>
    %13 = vector.extract_strided_slice %8 {offsets = [0, 0], sizes = [8, 8], strides = [1, 1]} : vector<8x32xbf16> to vector<8x8xbf16>
    "tpu.trace_start"() <{level = 10 : i32, message = "qd,kd->qk"}> : () -> ()
    %cst = arith.constant dense<0.000000e+00> : vector<8x8xf32>
    %14 = tpu.matmul %11, %12, %cst {dimension_numbers = #tpu.dot_dimension_numbers<[1], [1], [0], [0], [0, 0, 1, 0], [], []>} : vector<8x8xbf16>, vector<8x8xbf16>, vector<8x8xf32> -> vector<8x8xf32>
    "tpu.trace_stop"() : () -> ()
    %15 = vector.broadcast %10 : vector<1x8xf32> to vector<8x8xf32>
    %16 = arith.addf %14, %15 : vector<8x8xf32>
    %cst_8 = arith.constant dense<0xFF800000> : vector<8xf32>
    %17 = vector.multi_reduction <maximumf>, %16, %cst_8 [1] : vector<8x8xf32> to vector<8xf32>
    %18 = vector.shape_cast %17 : vector<8xf32> to vector<8x1xf32>
    %19 = vector.broadcast %18 : vector<8x1xf32> to vector<8x8xf32>
    %20 = arith.subf %16, %19 : vector<8x8xf32>
    %21 = math.exp %20 : vector<8x8xf32>
    %cst_9 = arith.constant dense<0.000000e+00> : vector<8xf32>
    %22 = vector.multi_reduction <add>, %21, %cst_9 [1] : vector<8x8xf32> to vector<8xf32>
    %23 = vector.shape_cast %22 : vector<8xf32> to vector<8x1xf32>
    %24 = tpu.reciprocal %23 {approx = true} : vector<8x1xf32> -> vector<8x1xf32>
    %25 = vector.broadcast %24 : vector<8x1xf32> to vector<8x8xf32>
    %26 = arith.mulf %21, %25 : vector<8x8xf32>
    %27 = arith.truncf %26 : vector<8x8xf32> to vector<8x8xbf16>
    %c0_10 = arith.constant 0 : index
    %c0_11 = arith.constant 0 : index
    %c0_12 = arith.constant 0 : index
    %c0_13 = arith.constant 0 : index
    %28 = vector.load %arg11[%c0_10, %c0_11, %c0_12, %c0_13] : memref<1x4x8x8xbf16, #tpu.memory_space<vmem>>, vector<1x1x8x8xbf16>
    %29 = vector.shape_cast %28 : vector<1x1x8x8xbf16> to vector<8x8xbf16>
    %30 = vector.shape_cast %27 : vector<8x8xbf16> to vector<1x1x8x8xbf16>
    tpu.vector_store %arg11[%c0_10, %c0_11, %c0_12, %c0_13], %30 {strides = array<i32>} : memref<1x4x8x8xbf16, #tpu.memory_space<vmem>>, vector<1x1x8x8xbf16>,
    %31 = arith.truncf %26 : vector<8x8xf32> to vector<8x8xbf16>
    %cst_14 = arith.constant dense<0.000000e+00> : vector<8x8xf32>
    %32 = tpu.matmul %31, %13, %cst_14 {dimension_numbers = #tpu.dot_dimension_numbers<[1], [0], [0], [1], [0, 0, 1, 1], [], []>} : vector<8x8xbf16>, vector<8x8xbf16>, vector<8x8xf32> -> vector<8x8xf32>
    %33 = vector.extract_strided_slice %6 {offsets = [0, 8], sizes = [8, 8], strides = [1, 1]} : vector<8x32xbf16> to vector<8x8xbf16>
    %34 = vector.extract_strided_slice %7 {offsets = [0, 8], sizes = [8, 8], strides = [1, 1]} : vector<8x32xbf16> to vector<8x8xbf16>
    %35 = vector.extract_strided_slice %8 {offsets = [0, 8], sizes = [8, 8], strides = [1, 1]} : vector<8x32xbf16> to vector<8x8xbf16>
    "tpu.trace_start"() <{level = 10 : i32, message = "qd,kd->qk"}> : () -> ()
    %cst_15 = arith.constant dense<0.000000e+00> : vector<8x8xf32>
    %36 = tpu.matmul %33, %34, %cst_15 {dimension_numbers = #tpu.dot_dimension_numbers<[1], [1], [0], [0], [0, 0, 1, 0], [], []>} : vector<8x8xbf16>, vector<8x8xbf16>, vector<8x8xf32> -> vector<8x8xf32>
    "tpu.trace_stop"() : () -> ()
    %37 = vector.broadcast %10 : vector<1x8xf32> to vector<8x8xf32>
    %38 = arith.addf %36, %37 : vector<8x8xf32>
    %cst_16 = arith.constant dense<0xFF800000> : vector<8xf32>
    %39 = vector.multi_reduction <maximumf>, %38, %cst_16 [1] : vector<8x8xf32> to vector<8xf32>
    %40 = vector.shape_cast %39 : vector<8xf32> to vector<8x1xf32>
    %41 = vector.broadcast %40 : vector<8x1xf32> to vector<8x8xf32>
    %42 = arith.subf %38, %41 : vector<8x8xf32>
    %43 = math.exp %42 : vector<8x8xf32>
    %cst_17 = arith.constant dense<0.000000e+00> : vector<8xf32>
    %44 = vector.multi_reduction <add>, %43, %cst_17 [1] : vector<8x8xf32> to vector<8xf32>
    %45 = vector.shape_cast %44 : vector<8xf32> to vector<8x1xf32>
    %46 = tpu.reciprocal %45 {approx = true} : vector<8x1xf32> -> vector<8x1xf32>
    %47 = vector.broadcast %46 : vector<8x1xf32> to vector<8x8xf32>
    %48 = arith.mulf %43, %47 : vector<8x8xf32>
    %49 = arith.truncf %48 : vector<8x8xf32> to vector<8x8xbf16>
    %c0_18 = arith.constant 0 : index
    %c1 = arith.constant 1 : index
    %c0_19 = arith.constant 0 : index
    %c0_20 = arith.constant 0 : index
    %50 = vector.load %arg11[%c0_18, %c1, %c0_19, %c0_20] : memref<1x4x8x8xbf16, #tpu.memory_space<vmem>>, vector<1x1x8x8xbf16>
    %51 = vector.shape_cast %50 : vector<1x1x8x8xbf16> to vector<8x8xbf16>
    %52 = vector.shape_cast %49 : vector<8x8xbf16> to vector<1x1x8x8xbf16>
    tpu.vector_store %arg11[%c0_18, %c1, %c0_19, %c0_20], %52 {strides = array<i32>} : memref<1x4x8x8xbf16, #tpu.memory_space<vmem>>, vector<1x1x8x8xbf16>,
    %53 = arith.truncf %48 : vector<8x8xf32> to vector<8x8xbf16>
    %cst_21 = arith.constant dense<0.000000e+00> : vector<8x8xf32>
    %54 = tpu.matmul %53, %35, %cst_21 {dimension_numbers = #tpu.dot_dimension_numbers<[1], [0], [0], [1], [0, 0, 1, 1], [], []>} : vector<8x8xbf16>, vector<8x8xbf16>, vector<8x8xf32> -> vector<8x8xf32>
    %55 = vector.extract_strided_slice %6 {offsets = [0, 16], sizes = [8, 8], strides = [1, 1]} : vector<8x32xbf16> to vector<8x8xbf16>
    %56 = vector.extract_strided_slice %7 {offsets = [0, 16], sizes = [8, 8], strides = [1, 1]} : vector<8x32xbf16> to vector<8x8xbf16>
    %57 = vector.extract_strided_slice %8 {offsets = [0, 16], sizes = [8, 8], strides = [1, 1]} : vector<8x32xbf16> to vector<8x8xbf16>
    "tpu.trace_start"() <{level = 10 : i32, message = "qd,kd->qk"}> : () -> ()
    %cst_22 = arith.constant dense<0.000000e+00> : vector<8x8xf32>
    %58 = tpu.matmul %55, %56, %cst_22 {dimension_numbers = #tpu.dot_dimension_numbers<[1], [1], [0], [0], [0, 0, 1, 0], [], []>} : vector<8x8xbf16>, vector<8x8xbf16>, vector<8x8xf32> -> vector<8x8xf32>
    "tpu.trace_stop"() : () -> ()
    %59 = vector.broadcast %10 : vector<1x8xf32> to vector<8x8xf32>
    %60 = arith.addf %58, %59 : vector<8x8xf32>
    %cst_23 = arith.constant dense<0xFF800000> : vector<8xf32>
    %61 = vector.multi_reduction <maximumf>, %60, %cst_23 [1] : vector<8x8xf32> to vector<8xf32>
    %62 = vector.shape_cast %61 : vector<8xf32> to vector<8x1xf32>
    %63 = vector.broadcast %62 : vector<8x1xf32> to vector<8x8xf32>
    %64 = arith.subf %60, %63 : vector<8x8xf32>
    %65 = math.exp %64 : vector<8x8xf32>
    %cst_24 = arith.constant dense<0.000000e+00> : vector<8xf32>
    %66 = vector.multi_reduction <add>, %65, %cst_24 [1] : vector<8x8xf32> to vector<8xf32>
    %67 = vector.shape_cast %66 : vector<8xf32> to vector<8x1xf32>
    %68 = tpu.reciprocal %67 {approx = true} : vector<8x1xf32> -> vector<8x1xf32>
    %69 = vector.broadcast %68 : vector<8x1xf32> to vector<8x8xf32>
    %70 = arith.mulf %65, %69 : vector<8x8xf32>
    %71 = arith.truncf %70 : vector<8x8xf32> to vector<8x8xbf16>
    %c0_25 = arith.constant 0 : index
    %c2 = arith.constant 2 : index
    %c0_26 = arith.constant 0 : index
    %c0_27 = arith.constant 0 : index
    %72 = vector.load %arg11[%c0_25, %c2, %c0_26, %c0_27] : memref<1x4x8x8xbf16, #tpu.memory_space<vmem>>, vector<1x1x8x8xbf16>
    %73 = vector.shape_cast %72 : vector<1x1x8x8xbf16> to vector<8x8xbf16>
    %74 = vector.shape_cast %71 : vector<8x8xbf16> to vector<1x1x8x8xbf16>
    tpu.vector_store %arg11[%c0_25, %c2, %c0_26, %c0_27], %74 {strides = array<i32>} : memref<1x4x8x8xbf16, #tpu.memory_space<vmem>>, vector<1x1x8x8xbf16>,
    %75 = arith.truncf %70 : vector<8x8xf32> to vector<8x8xbf16>
    %cst_28 = arith.constant dense<0.000000e+00> : vector<8x8xf32>
    %76 = tpu.matmul %75, %57, %cst_28 {dimension_numbers = #tpu.dot_dimension_numbers<[1], [0], [0], [1], [0, 0, 1, 1], [], []>} : vector<8x8xbf16>, vector<8x8xbf16>, vector<8x8xf32> -> vector<8x8xf32>
    %77 = vector.extract_strided_slice %6 {offsets = [0, 24], sizes = [8, 8], strides = [1, 1]} : vector<8x32xbf16> to vector<8x8xbf16>
    %78 = vector.extract_strided_slice %7 {offsets = [0, 24], sizes = [8, 8], strides = [1, 1]} : vector<8x32xbf16> to vector<8x8xbf16>
    %79 = vector.extract_strided_slice %8 {offsets = [0, 24], sizes = [8, 8], strides = [1, 1]} : vector<8x32xbf16> to vector<8x8xbf16>
    "tpu.trace_start"() <{level = 10 : i32, message = "qd,kd->qk"}> : () -> ()
    %cst_29 = arith.constant dense<0.000000e+00> : vector<8x8xf32>
    %80 = tpu.matmul %77, %78, %cst_29 {dimension_numbers = #tpu.dot_dimension_numbers<[1], [1], [0], [0], [0, 0, 1, 0], [], []>} : vector<8x8xbf16>, vector<8x8xbf16>, vector<8x8xf32> -> vector<8x8xf32>
    "tpu.trace_stop"() : () -> ()
    %81 = vector.broadcast %10 : vector<1x8xf32> to vector<8x8xf32>
    %82 = arith.addf %80, %81 : vector<8x8xf32>
    %cst_30 = arith.constant dense<0xFF800000> : vector<8xf32>
    %83 = vector.multi_reduction <maximumf>, %82, %cst_30 [1] : vector<8x8xf32> to vector<8xf32>
    %84 = vector.shape_cast %83 : vector<8xf32> to vector<8x1xf32>
    %85 = vector.broadcast %84 : vector<8x1xf32> to vector<8x8xf32>
    %86 = arith.subf %82, %85 : vector<8x8xf32>
    %87 = math.exp %86 : vector<8x8xf32>
    %cst_31 = arith.constant dense<0.000000e+00> : vector<8xf32>
    %88 = vector.multi_reduction <add>, %87, %cst_31 [1] : vector<8x8xf32> to vector<8xf32>
    %89 = vector.shape_cast %88 : vector<8xf32> to vector<8x1xf32>
    %90 = tpu.reciprocal %89 {approx = true} : vector<8x1xf32> -> vector<8x1xf32>
    %91 = vector.broadcast %90 : vector<8x1xf32> to vector<8x8xf32>
    %92 = arith.mulf %87, %91 : vector<8x8xf32>
    %93 = arith.truncf %92 : vector<8x8xf32> to vector<8x8xbf16>
    %c0_32 = arith.constant 0 : index
    %c3 = arith.constant 3 : index
    %c0_33 = arith.constant 0 : index
    %c0_34 = arith.constant 0 : index
    %94 = vector.load %arg11[%c0_32, %c3, %c0_33, %c0_34] : memref<1x4x8x8xbf16, #tpu.memory_space<vmem>>, vector<1x1x8x8xbf16>
    %95 = vector.shape_cast %94 : vector<1x1x8x8xbf16> to vector<8x8xbf16>
    %96 = vector.shape_cast %93 : vector<8x8xbf16> to vector<1x1x8x8xbf16>
    tpu.vector_store %arg11[%c0_32, %c3, %c0_33, %c0_34], %96 {strides = array<i32>} : memref<1x4x8x8xbf16, #tpu.memory_space<vmem>>, vector<1x1x8x8xbf16>,
    %97 = arith.truncf %92 : vector<8x8xf32> to vector<8x8xbf16>
    %cst_35 = arith.constant dense<0.000000e+00> : vector<8x8xf32>
    %98 = tpu.matmul %97, %79, %cst_35 {dimension_numbers = #tpu.dot_dimension_numbers<[1], [0], [0], [1], [0, 0, 1, 1], [], []>} : vector<8x8xbf16>, vector<8x8xbf16>, vector<8x8xf32> -> vector<8x8xf32>
    %99 = tpu.concatenate %32, %54, %76, %98 in 1 : vector<8x8xf32>, vector<8x8xf32>, vector<8x8xf32>, vector<8x8xf32> -> vector<8x32xf32>
    %100 = arith.truncf %99 : vector<8x32xf32> to vector<8x32xbf16>
    %c0_36 = arith.constant 0 : index
    %c0_37 = arith.constant 0 : index
    %101 = vector.load %arg6[%c0_36, %c0_37] : memref<32x32xbf16, #tpu.memory_space<vmem>>, vector<32x32xbf16>
    %cst_38 = arith.constant dense<0.000000e+00> : vector<8x32xf32>
    %102 = tpu.matmul %100, %101, %cst_38 {dimension_numbers = #tpu.dot_dimension_numbers<[1], [0], [0], [1], [0, 0, 1, 1], [], []>} : vector<8x32xbf16>, vector<32x32xbf16>, vector<8x32xf32> -> vector<8x32xf32>
    %c0_39 = arith.constant 0 : index
    %c0_40 = arith.constant 0 : index
    %103 = vector.load %arg7[%c0_39, %c0_40] : memref<1x32xf32, #tpu.memory_space<vmem>>, vector<1x32xf32>
    %104 = vector.broadcast %103 : vector<1x32xf32> to vector<8x32xf32>
    %105 = arith.addf %102, %104 : vector<8x32xf32>
    %c0_41 = arith.constant 0 : index
    %106 = arith.index_cast %4 : i32 to index
    %c0_42 = arith.constant 0 : index
    %107 = vector.load %arg2[%c0_41, %106, %c0_42] : memref<1x8x32xbf16, #tpu.memory_space<vmem>>, vector<1x8x32xbf16>
    %108 = vector.shape_cast %107 : vector<1x8x32xbf16> to vector<8x32xbf16>
    %109 = arith.extf %108 : vector<8x32xbf16> to vector<8x32xf32>
    %110 = arith.addf %105, %109 : vector<8x32xf32>
    %cst_43 = arith.constant dense<0.000000e+00> : vector<8xf32>
    %111 = vector.multi_reduction <add>, %110, %cst_43 [1] : vector<8x32xf32> to vector<8xf32>
    %112 = vector.shape_cast %111 : vector<8xf32> to vector<8x1xf32>
    %cst_44 = arith.constant 3.200000e+01 : f32
    %113 = vector.broadcast %cst_44 : f32 to vector<8x1xf32>
    %114 = arith.divf %112, %113 : vector<8x1xf32>
    %115 = vector.broadcast %114 : vector<8x1xf32> to vector<8x32xf32>
    %116 = arith.subf %110, %115 : vector<8x32xf32>
    %117 = arith.mulf %116, %116 : vector<8x32xf32>
    %cst_45 = arith.constant dense<0.000000e+00> : vector<8xf32>
    %118 = vector.multi_reduction <add>, %117, %cst_45 [1] : vector<8x32xf32> to vector<8xf32>
    %119 = vector.shape_cast %118 : vector<8xf32> to vector<8x1xf32>
    %cst_46 = arith.constant 3.200000e+01 : f32
    %120 = vector.broadcast %cst_46 : f32 to vector<8x1xf32>
    %121 = arith.divf %119, %120 : vector<8x1xf32>
    %122 = vector.broadcast %114 : vector<8x1xf32> to vector<8x32xf32>
    %123 = arith.subf %110, %122 : vector<8x32xf32>
    %cst_47 = arith.constant 9.99999974E-6 : f32
    %124 = vector.broadcast %cst_47 : f32 to vector<8x1xf32>
    %125 = arith.addf %121, %124 : vector<8x1xf32>
    %126 = math.rsqrt %125 : vector<8x1xf32>
    %127 = vector.broadcast %126 : vector<8x1xf32> to vector<8x32xf32>
    %128 = arith.mulf %123, %127 : vector<8x32xf32>
    %c0_48 = arith.constant 0 : index
    %c0_49 = arith.constant 0 : index
    %129 = vector.load %arg8[%c0_48, %c0_49] : memref<1x32xf32, #tpu.memory_space<vmem>>, vector<1x32xf32>
    %130 = vector.broadcast %129 : vector<1x32xf32> to vector<8x32xf32>
    %131 = arith.mulf %128, %130 : vector<8x32xf32>
    %c0_50 = arith.constant 0 : index
    %c0_51 = arith.constant 0 : index
    %132 = vector.load %arg9[%c0_50, %c0_51] : memref<1x32xf32, #tpu.memory_space<vmem>>, vector<1x32xf32>
    %133 = vector.broadcast %132 : vector<1x32xf32> to vector<8x32xf32>
    %134 = arith.addf %131, %133 : vector<8x32xf32>
    %135 = arith.truncf %134 : vector<8x32xf32> to vector<8x32xbf16>
    %c0_52 = arith.constant 0 : index
    %c0_53 = arith.constant 0 : index
    %c0_54 = arith.constant 0 : index
    %136 = vector.load %arg10[%c0_52, %c0_53, %c0_54] : memref<1x8x32xbf16, #tpu.memory_space<vmem>>, vector<1x8x32xbf16>
    %137 = vector.shape_cast %136 : vector<1x8x32xbf16> to vector<8x32xbf16>
    %138 = vector.shape_cast %135 : vector<8x32xbf16> to vector<1x8x32xbf16>
    tpu.vector_store %arg10[%c0_52, %c0_53, %c0_54], %138 {strides = array<i32>} : memref<1x8x32xbf16, #tpu.memory_space<vmem>>, vector<1x8x32xbf16>,
    return
  }
  func.func @transform_0(%arg0: i32, %arg1: i32) -> (i32, i32, i32) {
    %c0_i32 = arith.constant 0 : i32
    %c0_i32_0 = arith.constant 0 : i32
    %c0_i32_1 = arith.constant 0 : i32
    return %arg0, %c0_i32, %c0_i32_0 : i32, i32, i32
  }
  func.func @transform_1(%arg0: i32, %arg1: i32) -> (i32, i32, i32) {
    %c0_i32 = arith.constant 0 : i32
    %c0_i32_0 = arith.constant 0 : i32
    %c0_i32_1 = arith.constant 0 : i32
    return %arg0, %c0_i32, %c0_i32_0 : i32, i32, i32
  }
  func.func @transform_2(%arg0: i32, %arg1: i32) -> (i32, i32) {
    %c0_i32 = arith.constant 0 : i32
    %c0_i32_0 = arith.constant 0 : i32
    %c0_i32_1 = arith.constant 0 : i32
    return %c0_i32, %c0_i32_0 : i32, i32
  }
  func.func @transform_3(%arg0: i32, %arg1: i32) -> (i32, i32) {
    %c0_i32 = arith.constant 0 : i32
    %c0_i32_0 = arith.constant 0 : i32
    %c0_i32_1 = arith.constant 0 : i32
    return %c0_i32, %c0_i32_0 : i32, i32
  }
  func.func @transform_4(%arg0: i32, %arg1: i32) -> (i32, i32) {
    %c0_i32 = arith.constant 0 : i32
    %c0_i32_0 = arith.constant 0 : i32
    %c0_i32_1 = arith.constant 0 : i32
    return %c0_i32, %c0_i32_0 : i32, i32
  }
  func.func @transform_5(%arg0: i32, %arg1: i32) -> (i32, i32) {
    %c0_i32 = arith.constant 0 : i32
    %c0_i32_0 = arith.constant 0 : i32
    %c0_i32_1 = arith.constant 0 : i32
    return %c0_i32, %c0_i32_0 : i32, i32
  }
  func.func @transform_6(%arg0: i32, %arg1: i32) -> (i32, i32) {
    %c0_i32 = arith.constant 0 : i32
    %c0_i32_0 = arith.constant 0 : i32
    %c0_i32_1 = arith.constant 0 : i32
    return %c0_i32, %c0_i32_0 : i32, i32
  }
  func.func @transform_7(%arg0: i32, %arg1: i32) -> (i32, i32) {
    %c0_i32 = arith.constant 0 : i32
    %c0_i32_0 = arith.constant 0 : i32
    %c0_i32_1 = arith.constant 0 : i32
    return %c0_i32, %c0_i32_0 : i32, i32
  }
  func.func @transform_8(%arg0: i32, %arg1: i32) -> (i32, i32, i32) {
    %c0_i32 = arith.constant 0 : i32
    %c0_i32_0 = arith.constant 0 : i32
    return %arg0, %arg1, %c0_i32 : i32, i32, i32
  }
  func.func @transform_9(%arg0: i32, %arg1: i32) -> (i32, i32, i32, i32) {
    %c0_i32 = arith.constant 0 : i32
    %c0_i32_0 = arith.constant 0 : i32
    %c0_i32_1 = arith.constant 0 : i32
    return %arg0, %c0_i32, %arg1, %c0_i32_0 : i32, i32, i32, i32
  }
}

</mosaic_0001>

<bundles_post_ra>
// kernel: tpu_custom_call.1
= control target key start
LH: loop header
LB: loop body
LE: loop exit
PB: predicated region body
PF: predicated region fallthrough
CT: control target
= control target key end

     0   :  { %s2666_s0 = inlined_call_operand.hbm [shape: bf16[2,8,32], index: 0, kind: input, shape index: {}]   ;;  %s2667_s1 = inlined_call_operand.hbm [shape: f32[2,1,8], index: 1, kind: input, shape index: {}]   ;;  %s2668_s2 = inlined_call_operand.hbm [shape: bf16[32,96], index: 2, kind: input, shape index: {}]   ;;  %s2669_s3 = inlined_call_operand.hbm [shape: f32[1,96], index: 3, kind: input, shape index: {}]   ;;  %s2670_s4 = inlined_call_operand.hbm [shape: bf16[32,32], index: 4, kind: input, shape index: {}]   ;;  %s2671_s5 = inlined_call_operand.hbm [shape: f32[1,32], index: 5, kind: input, shape index: {}]   ;;  %s2672_s6 = inlined_call_operand.hbm [shape: f32[1,32], index: 6, kind: input, shape index: {}]   ;;  %s2673_s7 = inlined_call_operand.hbm [shape: f32[1,32], index: 7, kind: input, shape index: {}]   ;;  %s2674_s8 = inlined_call_operand.hbm [shape: bf16[2,8,32], index: 8, kind: output, shape index: {0}]   ;;  %s2675_s9 = inlined_call_operand.hbm [shape: bf16[2,4,8,8], index: 9, kind: output, shape index: {1}]  }
   0x1   :  { %2684 = sst [smem:[#allocation31_spill]] %s2666_s0 }
   0x2   :  { %2685 = sst [smem:[#allocation32_spill]] %s2668_s2 }
   0x3   :  { %2686 = sst [smem:[#allocation33_spill]] %s2669_s3 }
   0x4   :  { %2687 = sst [smem:[#allocation34_spill]] %s2674_s8 }
   0x5   :  { %2688 = sst [smem:[#allocation35_spill]] %s2675_s9 }
   0x6   :  { %15 = vsyncpa [#allocation6], 0 }
   0x7   :  { %17 = vsyncpa [#allocation6 + $0x1], 0 }
   0x8   :  { %18 = vsyncpa [#allocation9], 0 }
   0x9   :  { %20 = vsyncpa [#allocation9 + $0x1], 0 }
   0xa   :  { %21 = vsyncpa [#allocation12], 0 }
   0xb   :  { %22 = vsyncpa [#allocation15], 0 }
   0xc   :  { %23 = vsyncpa [#allocation18], 0 }
   0xd   :  { %24 = vsyncpa [#allocation7], 0 }
   0xe   :  { %26 = vsyncpa [#allocation7 + $0x1], 0 }
   0xf   :  { %27 = vsyncpa [#allocation21], 0 }
  0x10   :  { %29 = vsyncpa [#allocation21 + $0x1], 0  ;;  %s2149_s30 = smov 0   ;;  %s2151_s10 = smov 0  }
  0x11   :  { %s2153_s11 = smov 0   ;;  %s2155_s12 = smov 0  }
  0x12   :  { %s2157_s13 = smov 0   ;;  %s2159_s14 = smov 0  }
  0x13 LB: > { %2689 = sst [smem:[#allocation30_spill]] %s2066_s12  ;;  %s2180_s15 = sadd.s32 4294967295, %s2074_s14   ;;  %s2074_s14 = sphi %s2159_s14, %s35_s14   ;;  %s2070_s13 = sphi %s2157_s13, %s2725_s13   ;;  %s2066_s12 = sphi %s2155_s12, %s2724_s12   ;;  %s2062_s11 = sphi %s2153_s11, %s2723_s11   ;;  %s2058_s10 = sphi %s2151_s10, %s2722_s10   ;;  %s2054_s30 = sphi %s2149_s30, %s2721_s30  }
  0x14   : > { %p1399_p0 = scmp.ge.s32.totalorder %s2074_s14, 1  ;;  %p2679_p1 = scmp.eq.s32.totalorder %s2180_s15, 0 }
  0x15   : > { %p286_p2 = scmp.lt.s32.totalorder %s2074_s14, 3  ;;  %s2076_s17 = smov [#allocation10]  }
  0x16   : > { %s298_s18 = sshll.u32 %s2076_s17, 4  ;;  %s2077_s20 = smov [#allocation11]   ;;  %s2189_s18 = int_to_ptr.vmem [resolvable:$true] %s298_s18 }
  0x17   : > { %p2185_p3 = pnand %p1399_p0, %p286_p2  ;;  %s312_s21 = sshll.u32 %s2077_s20, 4  ;;  %s2200_s21 = int_to_ptr.vmem [resolvable:$true] %s312_s21 }
  0x18   : > { %s2078_s22 = smov [#allocation14]   ;;  %s2692_s2 = sld [smem:[#allocation32_spill]] }
  0x19   : > { %s2690_s16 = scalar_select %p2185_p3, 1, 0 }
  0x1a   : > { %p1573_p4 = pneg %p2185_p3  ;;  %s2202_s23 = sshll.u32 %s2078_s22, 4  ;;  %s337_s23 = int_to_ptr.vmem [resolvable:$true] %s2202_s23 }
  0x1c   : > { %p2196_p6 = pnand %p1573_p4, %p2679_p1 }
  0x1e   : > { %s1712_s26 = scalar_lea.hbm %s2692_s2, 256  ;;  %p2212_p8 = pneg %p2196_p6 }
  0x1f   : > { %p1713_p7 = scmp.ne.s32.totalorder %s2692_s2, %s1712_s26  ;;  %p1719_p11 = scmp.lt.u32.totalorder %s1712_s26, %s2692_s2 }
  0x21   : > { %p1715_p9 = pnand %p2212_p8, %p1713_p7 }
  0x23   : > { %p1716_p10 = pneg %p1715_p9 }
  0x25   : > { %p1721_p12 = pnand %p1719_p11, %p1716_p10 }
  0x27   : > { %1724 = shalt.err (!%p1721_p12)
}
  0x28   : > { %s1725_s22 = scalar_lea.vmem %s2189_s18, 256  ;;  %p1733_p4 = scmp.lt.s32.totalorder %s2189_s18, %s2189_s18 }
  0x29   : > { %p1726_p13 = scmp.ne.s32.totalorder %s2189_s18, %s1725_s22  ;;  %p1734_p5 = scmp.lt.s32.totalorder %s1725_s22, %s1725_s22 }
  0x2b   : > { %p1728_p0 = pnand %p1726_p13, %p2212_p8  ;;  %p1735_p7 = por %p1734_p5, %p1733_p4 }
  0x2d   : > { %p1729_p2 = pneg %p1728_p0 }
  0x2f   : > { %p1736_p9 = pnand %p1735_p7, %p1729_p2 }
  0x31   : > { %1739 = shalt.err (!%p1736_p9)
}
  0x32   : > { %s2681_s24 = smov 64   ;;  %s2080_s25 = smov 4  }
  0x33   : > { %1576 = dma.hbm_to_vmem [thread:$0]  (!%p2196_p6), %s2692_s2, 256, %s2189_s18, [#allocation9], %s2681_s24, %s2681_s24, %s2080_s25  }
  0x34   : > { %s2694_s3 = sld [smem:[#allocation33_spill]] }
  0x3a   : > { %s1740_s20 = scalar_lea.hbm %s2694_s3, 16 }
  0x3b   : > { %p1741_p5 = scmp.ne.s32.totalorder %s2694_s3, %s1740_s20  ;;  %p1747_p12 = scmp.lt.u32.totalorder %s1740_s20, %s2694_s3 }
  0x3d   : > { %p1743_p10 = pnand %p1741_p5, %p2212_p8 }
  0x3f   : > { %p1744_p11 = pneg %p1743_p10 }
  0x41   : > { %p1749_p13 = pnand %p1747_p12, %p1744_p11 }
  0x43   : > { %1752 = shalt.err (!%p1749_p13)
}
  0x44   : > { %s1753_s18 = scalar_lea.vmem %s2200_s21, 16  ;;  %s1760_s8 = scalar_lea.vmem %s2200_s21, 32 }
  0x45   : > { %p1754_p0 = scmp.ne.s32.totalorder %s2200_s21, %s1753_s18  ;;  %p1761_p7 = scmp.lt.s32.totalorder %s2200_s21, %s2200_s21 }
  0x46   : > { %p1762_p9 = scmp.lt.s32.totalorder %s1760_s8, %s1753_s18 }
  0x47   : > { %p1756_p2 = pnand %p1754_p0, %p2212_p8 }
  0x48   : > { %p1763_p5 = por %p1762_p9, %p1761_p7 }
  0x49   : > { %p1757_p4 = pneg %p1756_p2 }
  0x4b   : > { %p1764_p10 = pnand %p1763_p5, %p1757_p4 }
  0x4d   : > { %1767 = shalt.err (!%p1764_p10)
}
  0x4e   : > { %1579 = dma.hbm_to_vmem [thread:$0]  (!%p2196_p6), %s2694_s3, 16, %s2200_s21, [#allocation12]  }
  0x4f   : > { %s1768_s28 = scalar_lea.hbm %s2671_s5, 16 }
  0x50   : > { %p1769_p11 = scmp.ne.s32.totalorder %s2671_s5, %s1768_s28  ;;  %p1775_p0 = scmp.lt.u32.totalorder %s1768_s28, %s2671_s5 }
  0x52   : > { %p1771_p12 = pnand %p1769_p11, %p2212_p8 }
  0x54   : > { %p1772_p13 = pneg %p1771_p12 }
  0x56   : > { %p1777_p2 = pnand %p1775_p0, %p1772_p13 }
  0x58   : > { %1780 = shalt.err (!%p1777_p2)
}
  0x59   : > { %s1781_s8 = scalar_lea.vmem %s337_s23, 16  ;;  %s1788_s21 = scalar_lea.vmem %s337_s23, 32 }
  0x5a   : > { %p1782_p4 = scmp.ne.s32.totalorder %s337_s23, %s1781_s8  ;;  %p1789_p5 = scmp.lt.s32.totalorder %s337_s23, %s337_s23 }
  0x5b   : > { %p1790_p10 = scmp.lt.s32.totalorder %s1788_s21, %s1781_s8 }
  0x5c   : > { %p1784_p7 = pnand %p1782_p4, %p2212_p8 }
  0x5d   : > { %p1791_p1 = por %p1790_p10, %p1789_p5 }
  0x5e   : > { %p1785_p9 = pneg %p1784_p7 }
  0x60   : > { %p1792_p3 = pnand %p1791_p1, %p1785_p9 }
  0x62   : > { %1795 = shalt.err (!%p1792_p3)
}
  0x63   : > { %1585 = dma.hbm_to_vmem [thread:$0]  (!%p2196_p6), %s2671_s5, 16, %s337_s23, [#allocation15]  }
  0x64   : > { %s2081_s26 = smov [#allocation13]   ;;  %s2082_s28 = smov [#allocation16]  }
  0x65   : > { %s322_s27 = sshll.u32 %s2081_s26, 4  ;;  %s347_s17 = sshll.u32 %s2082_s28, 4  ;;  %s323_s27 = int_to_ptr.vmem [resolvable:$true] %s322_s27  ;;  %s348_s17 = int_to_ptr.vmem [resolvable:$true] %s347_s17 }
  0x66   : > { %s1796_s18 = scalar_lea.hbm %s2670_s4, 256 }
  0x67   : > { %p1797_p1 = scmp.ne.s32.totalorder %s2670_s4, %s1796_s18  ;;  %p1803_p12 = scmp.lt.u32.totalorder %s1796_s18, %s2670_s4 }
  0x69   : > { %p1799_p3 = pnand %p1797_p1, %p2212_p8 }
  0x6b   : > { %p1800_p11 = pneg %p1799_p3 }
  0x6d   : > { %p1805_p13 = pnand %p1803_p12, %p1800_p11 }
  0x6f   : > { %1808 = shalt.err (!%p1805_p13)
}
  0x70   : > { %s1809_s23 = scalar_lea.vmem %s323_s27, 256  ;;  %p1817_p7 = scmp.lt.s32.totalorder %s323_s27, %s323_s27 }
  0x71   : > { %p1810_p0 = scmp.ne.s32.totalorder %s323_s27, %s1809_s23  ;;  %p1818_p9 = scmp.lt.s32.totalorder %s1809_s23, %s1809_s23 }
  0x73   : > { %p1812_p2 = pnand %p1810_p0, %p2212_p8  ;;  %p1819_p5 = por %p1818_p9, %p1817_p7 }
  0x75   : > { %p1813_p4 = pneg %p1812_p2 }
  0x77   : > { %p1820_p10 = pnand %p1819_p5, %p1813_p4 }
  0x79   : > { %1823 = shalt.err (!%p1820_p10)
}
  0x7a   : > { %s2695_s12 = smov 64   ;;  %s1824_s22 = scalar_lea.hbm %s2672_s6, 16 }
  0x7b   : > { %1582 = dma.hbm_to_vmem [thread:$0]  (!%p2196_p6), %s2670_s4, 256, %s323_s27, [#allocation12], %s2695_s12, %s2695_s12, %s2080_s25  }
  0x7c   : > { %p1825_p1 = scmp.ne.s32.totalorder %s2672_s6, %s1824_s22  ;;  %p1831_p12 = scmp.lt.u32.totalorder %s1824_s22, %s2672_s6 }
  0x7e   : > { %p1827_p3 = pnand %p1825_p1, %p2212_p8 }
  0x80   : > { %p1828_p11 = pneg %p1827_p3 }
  0x82   : > { %p1833_p13 = pnand %p1831_p12, %p1828_p11 }
  0x84   : > { %1836 = shalt.err (!%p1833_p13)
}
  0x85   : > { %s1837_s23 = scalar_lea.vmem %s348_s17, 16  ;;  %s1844_s25 = scalar_lea.vmem %s348_s17, 32 }
  0x86   : > { %p1838_p0 = scmp.ne.s32.totalorder %s348_s17, %s1837_s23  ;;  %p1845_p7 = scmp.lt.s32.totalorder %s348_s17, %s348_s17 }
  0x87   : > { %p1846_p9 = scmp.lt.s32.totalorder %s1844_s25, %s1837_s23 }
  0x88   : > { %p1840_p2 = pnand %p1838_p0, %p2212_p8 }
  0x89   : > { %p1847_p5 = por %p1846_p9, %p1845_p7 }
  0x8a   : > { %p1841_p4 = pneg %p1840_p2 }
  0x8c   : > { %p1848_p10 = pnand %p1847_p5, %p1841_p4 }
  0x8e   : > { %1851 = shalt.err (!%p1848_p10)
}
  0x8f   : > { %1588 = dma.hbm_to_vmem [thread:$0]  (!%p2196_p6), %s2672_s6, 16, %s348_s17, [#allocation15]  }
  0x90   : > { %s2083_s24 = smov [#allocation17]   ;;  %s1852_s22 = scalar_lea.hbm %s2673_s7, 16 }
  0x91   : > { %s358_s26 = sshll.u32 %s2083_s24, 4  ;;  %p1853_p1 = scmp.ne.s32.totalorder %s2673_s7, %s1852_s22  ;;  %s359_s26 = int_to_ptr.vmem [resolvable:$true] %s358_s26 }
  0x92   : > { %p1859_p12 = scmp.lt.u32.totalorder %s1852_s22, %s2673_s7 }
  0x93   : > { %p1855_p3 = pnand %p1853_p1, %p2212_p8 }
  0x95   : > { %p1856_p11 = pneg %p1855_p3 }
  0x97   : > { %p1861_p13 = pnand %p1859_p12, %p1856_p11 }
  0x99   : > { %1864 = shalt.err (!%p1861_p13)
}
  0x9a   : > { %s1865_s17 = scalar_lea.vmem %s359_s26, 16  ;;  %s1872_s23 = scalar_lea.vmem %s359_s26, 32 }
  0x9b   : > { %p1866_p0 = scmp.ne.s32.totalorder %s359_s26, %s1865_s17  ;;  %p1873_p7 = scmp.lt.s32.totalorder %s359_s26, %s359_s26 }
  0x9c   : > { %p1874_p9 = scmp.lt.s32.totalorder %s1872_s23, %s1865_s17 }
  0x9d   : > { %p1868_p2 = pnand %p1866_p0, %p2212_p8 }
  0x9e   : > { %p1875_p5 = por %p1874_p9, %p1873_p7 }
  0x9f   : > { %p1869_p4 = pneg %p1868_p2 }
  0xa1   : > { %p1876_p10 = pnand %p1875_p5, %p1869_p4 }
  0xa3   : > { %1879 = shalt.err (!%p1876_p10)
}
  0xa4   : > { %1591 = dma.hbm_to_vmem [thread:$0]  (!%p2196_p6), %s2673_s7, 16, %s359_s26, [#allocation18]  }
  0xa5   : > { %s1398_s29 = sadd.s32 4294967294, %s2074_s14   ;;  %s47_s12 = sadd.s32 1, %s2070_s13 }
  0xa6   : > { %p49_p8 = scmp.ge.s32.totalorder %s47_s12, 2  ;;  %s54_s19 = sadd.s32 1, %s2062_s11 }
  0xa7   : > { %p61_p1 = scmp.ne.s32.totalorder %s2062_s11, %s2058_s10  ;;  %p62_p3 = scmp.eq.s32.totalorder %s2074_s14, 0 }
  0xa8   : > { %s2727_s12 = smov (%p49_p8, %s47_s12), 0  ;;  %p67_p12 = scmp.ne.s32.totalorder %s2058_s10, %s2054_s30 }
  0xa9   : > { %p2344_p11 = por %p62_p3, %p61_p1  ;;  %s51_s26 = ssub.s32 %s2070_s13, %s2727_s12 }
  0xaa   : > { %p245_p6 = scmp.eq.s32.totalorder %s2180_s15, 1  ;;  %p52_p13 = scmp.eq.s32.totalorder %s51_s26, 0 }
  0xab   : > { %p2697_p0 = scmp.eq.s32.totalorder %s2180_s15, 0  ;;  %p251_p7 = scmp.eq.s32.totalorder %s1398_s29, 1 }
  0xac   : > { %p2359_p4 = por %p245_p6, %p61_p1  ;;  %p1612_p5 = scmp.lt.s32.totalorder %s2074_s14, 2 }
  0xad   : > { %p2355_p2 = por %p2697_p0, %p67_p12  ;;  %p2366_p9 = por %p251_p7, %p67_p12 }
  0xae   : > { %s2699_s20 = scalar_select %p2359_p4, 1, 0 }
  0xaf   : > { %s2698_s28 = scalar_select %p2355_p2, 1, 0 }
  0xb0   : > { %s2364_s22 = scalar_select %p52_p13, %s2062_s11, %s54_s19  }
  0xb1   : > { %s2700_s18 = scalar_select %p2366_p9, 1, 0 }
  0xb2   : > { %s2372_s8 = sand.u32 1, %s2062_s11   ;;  %s1408_s21 = sshll.u32 %s2070_s13, 6 }
  0xb3   : > { %s1407_s9 = sshll.u32 %s2372_s8, 2  ;;  %s2701_s0 = sld [smem:[#allocation31_spill]] }
  0xb4   : > { %s373_s27 = scalar_lea.vmem [#allocation5], %s1407_s9  ;;  %p2383_p10 = pnand %p1612_p5, %p2344_p11 }
  0xb5   : > { %s380_s29 = sshll.u32 %s373_s27, 4  ;;  %s370_s2 = scalar_lea.sflag [#allocation6], %s2372_s8  ;;  %s2387_s29 = int_to_ptr.vmem [resolvable:$true] %s380_s29 }
  0xb6   : > { %p1882_p1 = pneg %p2383_p10 }
  0xb9   : > { %s2379_s25 = scalar_lea.hbm %s2701_s0, %s1408_s21  ;;  %s1885_s9 = scalar_lea.hbm %s2701_s0, 128 }
  0xba   : > { %s1880_s17 = scalar_lea.hbm %s2379_s25, 64  ;;  %p1886_p11 = scmp.lt.u32.totalorder %s2379_s25, %s2701_s0 }
  0xbb   : > { %p1881_p8 = scmp.ne.s32.totalorder %s2379_s25, %s1880_s17  ;;  %p1887_p6 = scmp.lt.u32.totalorder %s1885_s9, %s1880_s17 }
  0xbc   : > { %p1889_p0 = scmp.lt.u32.totalorder %s1880_s17, %s2379_s25 }
  0xbd   : > { %p1883_p3 = pnand %p1882_p1, %p1881_p8  ;;  %p1888_p13 = por %p1887_p6, %p1886_p11 }
  0xbf   : > { %p1884_p12 = pneg %p1883_p3  ;;  %p1890_p7 = por %p1889_p0, %p1888_p13 }
  0xc1   : > { %p1891_p5 = pnand %p1890_p7, %p1884_p12 }
  0xc3   : > { %1894 = shalt.err (!%p1891_p5)
}
  0xc4   : > { %s1895_s26 = scalar_lea.vmem %s2387_s29, 64  ;;  %s2084_s21 = smov [#allocation5]  }
  0xc5   : > { %p1896_p8 = scmp.ne.s32.totalorder %s2387_s29, %s1895_s26  ;;  %s1900_s24 = sshll.u32 %s2084_s21, 4  ;;  %s1901_s24 = int_to_ptr.vmem [resolvable:$false] %s1900_s24 }
  0xc6   : > { %s1902_s23 = scalar_lea.vmem %s1901_s24, 128  ;;  %p1903_p4 = scmp.lt.s32.totalorder %s2387_s29, %s1901_s24 }
  0xc7   : > { %p1898_p3 = pnand %p1896_p8, %p1882_p1  ;;  %p1904_p11 = scmp.lt.s32.totalorder %s1902_s23, %s1895_s26 }
  0xc9   : > { %p1899_p9 = pneg %p1898_p3  ;;  %p1905_p6 = por %p1904_p11, %p1903_p4 }
  0xcb   : > { %p1906_p13 = pnand %p1905_p6, %p1899_p9 }
  0xcd   : > { %1909 = shalt.err (!%p1906_p13)
}
  0xce   : > { %1595 = dma.hbm_to_vmem [thread:$0]  (!%p2383_p10), %s2379_s25, 64, %s2387_s29, %s370_s2  }
  0xcf   : > { %s1409_s17 = sshll.u32 %s2070_s13, 4  ;;  %s390_s26 = scalar_lea.vmem [#allocation8], %s2372_s8 }
  0xd0   : > { %s2420_s21 = scalar_lea.hbm %s2667_s1, %s1409_s17  ;;  %s397_s24 = sshll.u32 %s390_s26, 4  ;;  %s398_s24 = int_to_ptr.vmem [resolvable:$true] %s397_s24 }
  0xd1   : > { %s2703_s23 = sand.u32 1, %s2074_s14   ;;  %s1910_s3 = scalar_lea.hbm %s2420_s21, 16 }
  0xd2   : > { %s388_s0 = scalar_lea.sflag [#allocation9], %s2703_s23  ;;  %p1911_p4 = scmp.ne.s32.totalorder %s2420_s21, %s1910_s3 }
  0xd3   : > { %s1915_s29 = scalar_lea.hbm %s2667_s1, 32  ;;  %p1916_p0 = scmp.lt.u32.totalorder %s2420_s21, %s2667_s1 }
  0xd4   : > { %p1913_p9 = pnand %p1911_p4, %p1882_p1  ;;  %p1917_p7 = scmp.lt.u32.totalorder %s1915_s29, %s1910_s3 }
  0xd5   : > { %p1919_p8 = scmp.lt.u32.totalorder %s1910_s3, %s2420_s21 }
  0xd6   : > { %p1914_p12 = pneg %p1913_p9  ;;  %p1918_p5 = por %p1917_p7, %p1916_p0 }
  0xd8   : > { %p1920_p3 = por %p1919_p8, %p1918_p5 }
  0xda   : > { %p1921_p11 = pnand %p1920_p3, %p1914_p12 }
  0xdc   : > { %1924 = shalt.err (!%p1921_p11)
}
  0xdd   : > { %s1925_s8 = scalar_lea.vmem %s398_s24, 16  ;;  %s2085_s27 = smov [#allocation8]  }
  0xde   : > { %p1926_p6 = scmp.ne.s32.totalorder %s398_s24, %s1925_s8  ;;  %s1930_s26 = sshll.u32 %s2085_s27, 4  ;;  %s1931_s26 = int_to_ptr.vmem [resolvable:$false] %s1930_s26 }
  0xdf   : > { %s1932_s23 = scalar_lea.vmem %s1931_s26, 32  ;;  %p1933_p9 = scmp.lt.s32.totalorder %s398_s24, %s1931_s26 }
  0xe0   : > { %p1928_p13 = pnand %p1926_p6, %p1882_p1  ;;  %p1934_p2 = scmp.lt.s32.totalorder %s1932_s23, %s1925_s8 }
  0xe2   : > { %p1929_p4 = pneg %p1928_p13  ;;  %p1935_p0 = por %p1934_p2, %p1933_p9 }
  0xe4   : > { %p1936_p7 = pnand %p1935_p0, %p1929_p4 }
  0xe6   : > { %1939 = shalt.err (!%p1936_p7)
}
  0xe7   : > { %1598 = dma.hbm_to_vmem [thread:$0]  (!%p2383_p10), %s2420_s21, 16, %s398_s24, %s388_s0  }
  0xe8   : > { %p2704_p12 = scmp.ne.s32.totalorder %s2690_s16, 0 }
  0xe9   : > { %s2447_s3 = sand.u32 (!%p2704_p12), 1, %s2058_s10   ;;  %p2705_p2 = scmp.ne.s32.totalorder (!%p2704_p12), %s2698_s28, 0 }
  0xea   : > { %406 = sbr.rel (%p2704_p12) target bundleno = 2162 (0x872), region = 52  ;;  %s1411_s2 = sshll.u32 (!%p2704_p12), %s2447_s3, 2 }
  0xeb   : > { %s409_s25 = scalar_lea.sflag (!%p2704_p12), [#allocation6], %s2447_s3  ;;  %s2453_s29 = scalar_lea.vmem (!%p2704_p12), [#allocation5], %s1411_s2 }
  0xf1   : > { %2021 = dma.done.wait (%p2705_p2), %s409_s25, 64  }
  0xf2   : > { %2023 = vsyncadd (%p2705_p2), %s409_s25, 4294967232  ;;  %s417_s0 = sand.u32 1, %s2180_s15   ;;  %s420_s19 = scalar_lea.vmem [#allocation8], %s2447_s3 }
  0xf3   : > { %s418_s16 = scalar_lea.sflag [#allocation9], %s417_s0 }
  0xf4   : > { %2025 = dma.done.wait (%p2705_p2), %s418_s16, 16  }
  0xf5   : > { %2027 = vsyncadd (%p2705_p2), %s418_s16, 4294967280  ;;  %p2706_p10 = scmp.eq.s32.totalorder %s2180_s15, 0 }
  0xf7   : > { %2029 = dma.done.wait (%p2706_p10), [#allocation9], 256   ;;  %p2707_p1 = pmov %p2706_p10 }
  0xf9   : > { %2031 = vsyncadd (%p2707_p1), [#allocation9], 4294967040  ;;  %p2708_p5 = pmov %p2707_p1 }
  0xfa   : > { %p2709_p8 = pmov %p2707_p1 }
  0xfb   : > { %2033 = dma.done.wait (%p2708_p5), [#allocation12], 272  }
  0xfc   : > { %2035 = vsyncadd (%p2709_p8), [#allocation12], 4294967024  ;;  %p2710_p3 = pmov %p2707_p1 }
  0xfd   : > { %p2711_p11 = pmov %p2707_p1 }
  0xfe   : > { %2037 = dma.done.wait (%p2710_p3), [#allocation15], 32  }
  0xff   : > { %2039 = vsyncadd (%p2711_p11), [#allocation15], 4294967264  ;;  %p2712_p6 = pmov %p2707_p1 }
 0x100   : > { %p2713_p13 = pmov %p2707_p1 }
 0x101   : > { %2041 = dma.done.wait (%p2712_p6), [#allocation18], 16  }
 0x102   : > { %2043 = vsyncadd (%p2713_p13), [#allocation18], 4294967280  ;;  %v2086_v0 = vmov 0.0   ;;  %vm2087_vm0 = vmmov 0   ;;  %v1687_v1 = vld [vmem:[#allocation10] sm:$0xff]   ;;  %v1688_v2 = vld [vmem:[#allocation10 + $0x8] sm:$0xff]  }
 0x103   : > { %1477 = vmatprep.subr.bf16.mxu0 %v2086_v0  ;;  %1481 = vmatprep.mubr.msk.bf16.mxu0 %vm2087_vm0, %v2086_v0  ;;  %v493_v3 = vld [vmem:[%s2453_s29] sm:$0xf]  ;;  %vm517_vm1 = vcmask 261120   ;;  %v1420_v4 = vld [vmem:[#allocation11] ss:$0 sm:$0xff]  ;;  %vm562_vm2 = vcmask 257024  }
 0x104   : > { %1485 = vmatprep.subr.bf16.mxu1 %v2086_v0  ;;  %1487 = vmatprep.mubr.msk.bf16.mxu1 %vm2087_vm0, %v2086_v0  ;;  %s2088_s15 = smov 96   ;;  %s2089_s28 = smov 120   ;;  %vm590_vm3 = vcmask 64512   ;;  %v1425_v26 = vld [vmem:[%s420_s19] ss:$0 sm:$0xff]  ;;  %vm654_vm4 = vcmask 1043456  }
 0x105   : > { %1478 = vmatpush3.bf16.msra.mxu0 %v1687_v1  ;;  %s2090_s21 = smov 112   ;;  %s2091_s24 = smov 104   ;;  %vm649_vm5 = vcmask 60416   ;;  %vm1056_vm6 = vcmask 130048   ;;  %vm1058_vm7 = vcmask 195584  }
 0x106   : > { %1479 = vmatprep.subr.bf16.mxu0 %v2086_v0  ;;  %s2092_s17 = smov 64   ;;  %s1419_s9 = sshll.u32 %s2447_s3, 4 }
 0x107   : > { %s2544_s8 = scalar_lea.vmem [#allocation20], %s1419_s9  ;;  %s2093_s27 = smov 8  }
 0x108   : > { %s2094_s26 = smov 16   ;;  %s2095_s23 = smov 24  }
 0x109   : > { %1480 = vmatpush3.bf16.msra.mxu0 %v1688_v2  ;;  %s2714_s25 = sld [smem:[#allocation30_spill]]  ;;  %s1200_s0 = sshll.u32 %s2544_s8, 4  ;;  %s2582_s0 = int_to_ptr.vmem [resolvable:$true] %s1200_s0 }
 0x10a   : > { %1491 = vmatprep.subr.bf16.mxu0 %v2086_v0  ;;  %p2716_p9 = scmp.ne.s32.totalorder %s2699_s20, 0  ;;  %s2096_s9 = smov [#allocation20]  }
 0x10c   : > { %1482 = vmatmul.mubr.msk.bf16.vlgmr.msra.gmra.mrb[0].mxu0 %vm517_vm1, %v493_v3 }
 0x10d   : > { %1493 = vmatprep.mubr.msk.bf16.mxu0 %vm2087_vm0, %v2086_v0 }
 0x1df   : > { %v555_v5 = vpop.f32.mrb[0].mxu0 }
 0x1e0   : > { %v556_v6 = vadd.f32 %v1420_v4, %v555_v5  ;;  %v1483_v7 = vpop.f32.mrb[1].mxu0 }
 0x1e1   : > { %v558_v8 = vpop.f32.mrb[2].mxu0 }
 0x1e2   : > { %v2493_v9 = vpack.c.bf16 %v556_v6, %v556_v6  ;;  %v1484_v10 = vpop.f32.mrb[3].mxu0 }
 0x1e4   : > { %563 = vst.msk [vmem:[#allocation2] sm:$0xf] %vm562_vm2, %v2493_v9  ;;  %567 = vrot.lane.b32.xlu0 %v2493_v9, %s2088_s15  ;;  %s2715_s15 = sld [smem:[#allocation35_spill]] }
 0x1eb   : > { %v580_v11 = vld [vmem:[#allocation2] sm:$0xf] }
 0x1ec   : > { %v1428_v12 = vcombine.low %v580_v11, %v580_v11 }
 0x1ee   : > { %701 = vrot.lane.b32.xlu1 %v1428_v12, %s2089_s28 }
 0x256   : > { %v568_v13 = vpop.permute.xlu0 %567 }
 0x257   : > { %570 = vst.msk [vmem:[#allocation3] sm:$0xf] %vm562_vm2, %v568_v13 }
 0x25e   : > { %v581_v14 = vld [vmem:[#allocation3] sm:$0xf] }
 0x25f   : > { %v595_v15 = vsel %vm590_vm3, %v581_v14, 0  ;;  %v1429_v16 = vcombine.low %v581_v14, %v581_v14 }
 0x260   : > { %1486 = vmatpush3.bf16.xpose.msra.mxu1 %v595_v15  ;;  %v702_v19 = vpop.permute.xlu1 %701 }
 0x261   : > { %706 = vrot.lane.b32.xlu0 %v1429_v16, %s2089_s28  ;;  %821 = vrot.lane.b32.xlu1 %v1429_v16, %s2090_s21 }
 0x262   : > { %1497 = vmatprep.subr.bf16.mxu1 %v2086_v0 }
 0x265   : > { %819 = vrot.lane.b32.xlu0 %v1428_v12, %s2090_s21  ;;  %933 = vrot.lane.b32.xlu1 %v1429_v16, %s2091_s24 }
 0x267   : > { %1488 = vmatmul.mubr.msk.bf16.vlgmr.msra.gmra.mrb[0].mxu1 %vm590_vm3, %v580_v11 }
 0x268   : > { %1499 = vmatprep.mubr.msk.bf16.mxu1 %vm2087_vm0, %v2086_v0 }
 0x269   : > { %931 = vrot.lane.b32.xlu0 %v1428_v12, %s2091_s24 }
 0x2d3   : > { %v707_v17 = vpop.permute.xlu0 %706  ;;  %v822_v20 = vpop.permute.xlu1 %821 }
 0x2d4   : > { %v712_v18 = vsel %vm590_vm3, %v707_v17, 0  ;;  %v827_v21 = vsel %vm590_vm3, %v822_v20, 0 }
 0x2d5   : > { %1498 = vmatpush3.bf16.xpose.msra.mxu1 %v712_v18 }
 0x2d6   : > { %1509 = vmatprep.subr.bf16.mxu1 %v2086_v0 }
 0x2d7   : > { %v934_v22 = vpop.permute.xlu1 %933  ;;  %v820_v23 = vpop.permute.xlu0 %819 }
 0x2d8   : > { %v939_v24 = vsel %vm590_vm3, %v934_v22, 0 }
 0x2db   : > { %v932_v25 = vpop.permute.xlu0 %931 }
 0x2dc   : > { %1500 = vmatmul.mubr.msk.bf16.vlgmr.msra.gmra.mrb[4].mxu1 %vm590_vm3, %v702_v19 }
 0x2dd   : > { %1510 = vmatpush3.bf16.xpose.msra.mxu1 %v827_v21  ;;  %1511 = vmatprep.mubr.msk.bf16.mxu1 %vm2087_vm0, %v2086_v0 }
 0x2de   : > { %1521 = vmatprep.subr.bf16.mxu1 %v2086_v0 }
 0x2e4   : > { %1512 = vmatmul.mubr.msk.bf16.vlgmr.msra.gmra.mrb[8].mxu1 %vm590_vm3, %v820_v23 }
 0x2e5   : > { %1522 = vmatpush3.bf16.xpose.msra.mxu1 %v939_v24  ;;  %1523 = vmatprep.mubr.msk.bf16.mxu1 %vm2087_vm0, %v2086_v0 }
 0x2e6   : > { %1533 = vmatprep.subr.bf16.mxu1 %v2086_v0 }
 0x2ec   : > { %1524 = vmatmul.mubr.msk.bf16.vlgmr.msra.gmra.mrb[12].mxu1 %vm590_vm3, %v932_v25 }
 0x2ed   : > { %1537 = vmatprep.mubr.msk.bf16.mxu1 %vm2087_vm0, %v2086_v0 }
 0x33a   : > { %v631_v27 = vpop.f32.mrb[0].mxu1 }
 0x33b   : > { %v632_v28 = vadd.f32 %v1425_v26, %v631_v27  ;;  %v1489_v29 = vpop.f32.mrb[1].mxu1 }
 0x33c   : > { %v634_v30 = vpop.f32.mrb[2].mxu1 }
 0x33d   : > { %v1490_v31 = vpop.f32.mrb[3].mxu1  ;;  %v637_v32 = vsel %vm590_vm3, %v632_v28, -inf }
 0x33e   : > { %638 = vmax.xlane.f32.xlu1 %v637_v32 }
 0x3af   : > { %v748_v33 = vpop.f32.mrb[4].mxu1 }
 0x3b0   : > { %v749_v34 = vadd.f32 %v1425_v26, %v748_v33  ;;  %v1501_v35 = vpop.f32.mrb[5].mxu1 }
 0x3b1   : > { %v751_v36 = vpop.f32.mrb[6].mxu1 }
 0x3b2   : > { %v1502_v37 = vpop.f32.mrb[7].mxu1  ;;  %v754_v38 = vsel %vm590_vm3, %v749_v34, -inf }
 0x3b3   : > { %755 = vmax.xlane.f32.xlu0 %v754_v38  ;;  %v1692_v38 = vld [vmem:[#allocation13] sm:$0xff]  }
 0x3b4   : > { %1534 = vmatpush3.bf16.msra.mxu1 %v1692_v38 }
 0x3b5   : > { %1535 = vmatprep.subr.bf16.mxu1 %v2086_v0 }
 0x3b7   : > { %v863_v39 = vpop.f32.mrb[8].mxu1 }
 0x3b8   : > { %v864_v40 = vadd.f32 %v1425_v26, %v863_v39  ;;  %v1513_v41 = vpop.f32.mrb[9].mxu1 }
 0x3b9   : > { %v866_v42 = vpop.f32.mrb[10].mxu1 }
 0x3ba   : > { %v1514_v43 = vpop.f32.mrb[11].mxu1  ;;  %v869_v44 = vsel %vm590_vm3, %v864_v40, -inf }
 0x3bb   : > { %870 = vmax.xlane.f32.xlu0 %v869_v44  ;;  %v1693_v43 = vld [vmem:[#allocation13 + $0x8] sm:$0xff]  }
 0x3bc   : > { %1536 = vmatpush3.bf16.msra.mxu1 %v1693_v43 }
 0x3bf   : > { %v975_v45 = vpop.f32.mrb[12].mxu1 }
 0x3c0   : > { %v976_v46 = vadd.f32 %v1425_v26, %v975_v45  ;;  %v1525_v47 = vpop.f32.mrb[13].mxu1 }
 0x3c1   : > { %v978_v48 = vpop.f32.mrb[14].mxu1 }
 0x3c2   : > { %v1526_v49 = vpop.f32.mrb[15].mxu1  ;;  %v981_v50 = vsel %vm590_vm3, %v976_v46, -inf }
 0x3c3   : > { %982 = vmax.xlane.f32.xlu1 %v981_v50 }
 0x3cb   : > { %v639_v51 = vpop.xlane.xlu1 %638 }
 0x3cc   : > { %v640_v52 = vsub.f32 %v632_v28, %v639_v51 }
 0x3ce   : > { %v641_v53 = vmul.f32 1.442695, %v640_v52 }
 0x3d0   : > { %1694 = vpow2.f32 %v641_v53 }
 0x3d1   : > { %571 = vrot.lane.b32.xlu0 %v2493_v9, %s2092_s17 }
 0x3da   : > { %v1695_v54 = vpop.eup %1694 }
 0x3db   : > { %v643_v55 = vsel %vm590_vm3, %v1695_v54, 0.0 }
 0x3dc   : > { %644 = vadd.xlane.f32.xlu1 %v643_v55 }
 0x440   : > { %v756_v56 = vpop.xlane.xlu0 %755 }
 0x441   : > { %v757_v57 = vsub.f32 %v749_v34, %v756_v56 }
 0x443   : > { %v758_v58 = vmul.f32 1.442695, %v757_v57 }
 0x445   : > { %1696 = vpow2.f32 %v758_v58  ;;  %v1130_v58 = vld [vmem:[%s2453_s29] sm:$0xf]  ;;  %s1454_s29 = sshll.u32 %s2714_s25, 8 }
 0x448   : > { %v871_v59 = vpop.xlane.xlu0 %870 }
 0x449   : > { %v872_v60 = vsub.f32 %v864_v40, %v871_v59  ;;  %v1440_v59 = vld [vmem:[#allocation14] ss:$0 sm:$0xff] }
 0x44b   : > { %v873_v61 = vmul.f32 1.442695, %v872_v60  ;;  %v1131_v60 = vunpack.c.l.bf16 %v1130_v58 }
 0x44c   : > { %v572_v62 = vpop.permute.xlu0 %571 }
 0x44d   : > { %1698 = vpow2.f32 %v873_v61  ;;  %574 = vst.msk [vmem:[#allocation4] sm:$0xf] %vm562_vm2, %v572_v62 }
 0x44f   : > { %v1697_v63 = vpop.eup %1696 }
 0x450   : > { %v983_v1 = vpop.xlane.xlu1 %982  ;;  %v760_v2 = vsel %vm590_vm3, %v1697_v63, 0.0 }
 0x451   : > { %v984_v3 = vsub.f32 %v976_v46, %v983_v1  ;;  %761 = vadd.xlane.f32.xlu1 %v760_v2 }
 0x453   : > { %v985_v4 = vmul.f32 1.442695, %v984_v3 }
 0x454   : > { %v582_v5 = vld [vmem:[#allocation4] sm:$0xf] }
 0x455   : > { %1700 = vpow2.f32 %v985_v4  ;;  %v656_v6 = vsel %vm654_vm4, %v582_v5, 0  ;;  %v1432_v7 = vcombine.low %v582_v5, %v582_v5 }
 0x456   : > { %1492 = vmatpush3.bf16.msra.mxu0 %v656_v6 }
 0x457   : > { %v1699_v8 = vpop.eup %1698  ;;  %883 = vrot.lane.b32.xlu0 %v1432_v7, %s2090_s21  ;;  %1503 = vmatprep.subr.bf16.mxu0 %v2086_v0  ;;  %s1172_s21 = scalar_lea.sflag [#allocation21], %s2447_s3 }
 0x458   : > { %v875_v9 = vsel %vm590_vm3, %v1699_v8, 0.0 }
 0x459   : > { %876 = vadd.xlane.f32.xlu1 %v875_v9 }
 0x45b   : > { %995 = vrot.lane.b32.xlu0 %v1432_v7, %s2091_s24  ;;  %s1940_s24 = scalar_lea.vmem %s2582_s0, 256 }
 0x45c   : > { %p1941_p4 = scmp.ne.s32.totalorder %s2582_s0, %s1940_s24 }
 0x45e   : > { %p1942_p0 = pnand %p1941_p4, %p2716_p9 }
 0x45f   : > { %v1701_v10 = vpop.eup %1700 }
 0x460   : > { %v987_v11 = vsel %vm590_vm3, %v1701_v10, 0.0  ;;  %p1943_p7 = pneg %p1942_p0 }
 0x461   : > { %988 = vadd.xlane.f32.xlu1 %v987_v11 }
 0x469   : > { %v645_v12 = vpop.xlane.xlu1 %644 }
 0x46a   : > { %1702 = vrcp.f32 %v645_v12 }
 0x472   : > { %771 = vrot.lane.b32.xlu1 %v1432_v7, %s2089_s28  ;;  %s2580_s28 = scalar_lea.hbm %s2715_s15, %s1454_s29 }
 0x474   : > { %v1703_v13 = vpop.eup %1702 }
 0x475   : > { %v647_v14 = vmul.f32 %v1703_v13, %v1695_v54 }
 0x477   : > { %v648_v15 = vpack.c.bf16 %v647_v14, %v647_v14 }
 0x479   : > { %650 = vst.msk [vmem:[%s2544_s8] sm:$0xf] %vm649_vm5, %v648_v15  ;;  %1494 = vmatmul.mubr.msk.bf16.vlgmr.msra.gmra.mrb[4].mxu0 %vm590_vm3, %v648_v15 }
 0x47a   : > { %1505 = vmatprep.mubr.msk.bf16.mxu0 %vm2087_vm0, %v2086_v0 }
 0x4c9   : > { %v884_v26 = vpop.permute.xlu0 %883 }
 0x4ca   : > { %v889_v28 = vsel %vm654_vm4, %v884_v26, 0 }
 0x4cd   : > { %v996_v31 = vpop.permute.xlu0 %995 }
 0x4ce   : > { %v1001_v33 = vsel %vm654_vm4, %v996_v31, 0 }
 0x4de   : > { %v762_v16 = vpop.xlane.xlu1 %761 }
 0x4df   : > { %1704 = vrcp.f32 %v762_v16 }
 0x4e6   : > { %v877_v17 = vpop.xlane.xlu1 %876 }
 0x4e7   : > { %1706 = vrcp.f32 %v877_v17 }
 0x4e9   : > { %v1705_v18 = vpop.eup %1704 }
 0x4ea   : > { %v764_v19 = vmul.f32 %v1705_v18, %v1697_v63 }
 0x4ec   : > { %v765_v20 = vpack.c.bf16 %v764_v19, %v764_v19 }
 0x4ee   : > { %v989_v21 = vpop.xlane.xlu1 %988  ;;  %1431 = vst.msk [vmem:[%s2544_s8 + $0x4] sm:$0xf] %vm649_vm5, %v765_v20 }
 0x4ef   : > { %1708 = vrcp.f32 %v989_v21 }
 0x4f1   : > { %v1707_v22 = vpop.eup %1706 }
 0x4f2   : > { %v879_v23 = vmul.f32 %v1707_v22, %v1699_v8  ;;  %v772_v24 = vpop.permute.xlu1 %771 }
 0x4f3   : > { %v777_v25 = vsel %vm654_vm4, %v772_v24, 0 }
 0x4f4   : > { %1504 = vmatpush3.bf16.msra.mxu0 %v777_v25  ;;  %v880_v27 = vpack.c.bf16 %v879_v23, %v879_v23 }
 0x4f5   : > { %1515 = vmatprep.subr.bf16.mxu0 %v2086_v0 }
 0x4f6   : > { %1435 = vst.msk [vmem:[%s2544_s8 + $0x8] sm:$0xf] %vm649_vm5, %v880_v27 }
 0x4f7   : > { %1506 = vmatmul.mubr.msk.bf16.vlgmr.msra.gmra.mrb[8].mxu0 %vm590_vm3, %v765_v20 }
 0x4f8   : > { %1516 = vmatpush3.bf16.msra.mxu0 %v889_v28  ;;  %1517 = vmatprep.mubr.msk.bf16.mxu0 %vm2087_vm0, %v2086_v0 }
 0x4f9   : > { %v1709_v29 = vpop.eup %1708  ;;  %1527 = vmatprep.subr.bf16.mxu0 %v2086_v0 }
 0x4fa   : > { %v991_v30 = vmul.f32 %v1709_v29, %v1701_v10 }
 0x4fc   : > { %v992_v32 = vpack.c.bf16 %v991_v30, %v991_v30 }
 0x4fe   : > { %1438 = vst.msk [vmem:[%s2544_s8 + $0xc] sm:$0xf] %vm649_vm5, %v992_v32 }
 0x4ff   : > { %1518 = vmatmul.mubr.msk.bf16.vlgmr.msra.gmra.mrb[12].mxu0 %vm590_vm3, %v880_v27 }
 0x500   : > { %1528 = vmatpush3.bf16.msra.mxu0 %v1001_v33  ;;  %1529 = vmatprep.mubr.msk.bf16.mxu0 %vm2087_vm0, %v2086_v0 }
 0x507   : > { %1530 = vmatmul.mubr.msk.bf16.vlgmr.msra.gmra.mrb[16].mxu0 %vm590_vm3, %v992_v32 }
 0x54c   : > { %v692_v34 = vpop.f32.mrb[4].mxu0 }
 0x54d   : > { %v1495_v35 = vpop.f32.mrb[5].mxu0 }
 0x54e   : > { %v695_v36 = vpop.f32.mrb[6].mxu0 }
 0x54f   : > { %v1496_v37 = vpop.f32.mrb[7].mxu0 }
 0x5ca   : > { %v813_v39 = vpop.f32.mrb[8].mxu0 }
 0x5cb   : > { %1044 = vrot.lane.b32.xlu0 %v813_v39, %s2093_s27  ;;  %v1507_v40 = vpop.f32.mrb[9].mxu0  ;;  %s1944_s27 = sshll.u32 %s2096_s9, 4  ;;  %s1945_s27 = int_to_ptr.vmem [resolvable:$false] %s1944_s27 }
 0x5cc   : > { %v816_v41 = vpop.f32.mrb[10].mxu0  ;;  %s1946_s8 = scalar_lea.vmem %s1945_s27, 512  ;;  %p1947_p12 = scmp.lt.s32.totalorder %s2582_s0, %s1945_s27 }
 0x5cd   : > { %v1508_v42 = vpop.f32.mrb[11].mxu0  ;;  %p1948_p2 = scmp.lt.s32.totalorder %s1946_s8, %s1940_s24 }
 0x5cf   : > { %p1949_p10 = por %p1948_p2, %p1947_p12 }
 0x5d1   : > { %p1950_p1 = pnand %p1949_p10, %p1943_p7 }
 0x5d2   : > { %v925_v44 = vpop.f32.mrb[12].mxu0 }
 0x5d3   : > { %1048 = vrot.lane.b32.xlu0 %v925_v44, %s2094_s26  ;;  %v1519_v45 = vpop.f32.mrb[13].mxu0 }
 0x5d4   : > { %v928_v46 = vpop.f32.mrb[14].mxu0 }
 0x5d5   : > { %v1520_v47 = vpop.f32.mrb[15].mxu0 }
 0x5da   : > { %v1037_v48 = vpop.f32.mrb[16].mxu0 }
 0x5db   : > { %1052 = vrot.lane.b32.xlu1 %v1037_v48, %s2095_s23  ;;  %v1531_v49 = vpop.f32.mrb[17].mxu0 }
 0x5dc   : > { %v1040_v0 = vpop.f32.mrb[18].mxu0 }
 0x5dd   : > { %v1532_v50 = vpop.f32.mrb[19].mxu0 }
 0x63d   : > { %v1045_v51 = vpop.permute.xlu0 %1044 }
 0x63e   : > { %v1055_v53 = vsel %vm590_vm3, %v692_v34, %v1045_v51 }
 0x645   : > { %v1049_v52 = vpop.permute.xlu0 %1048 }
 0x646   : > { %v1057_v54 = vsel %vm1056_vm6, %v1055_v53, %v1049_v52 }
 0x64d   : > { %v1053_v55 = vpop.permute.xlu1 %1052 }
 0x64e   : > { %v1059_v56 = vsel %vm1058_vm7, %v1057_v54, %v1053_v55 }
 0x64f   : > { %v1060_v57 = vpack.c.bf16 %v1059_v56, %v1059_v56 }
 0x651   : > { %1538 = vmatmul.mubr.msk.bf16.vlgmr.msra.gmra.mrb[16].mxu1 %vm517_vm1, %v1060_v57 }
 0x724   : > { %v1122_v61 = vpop.f32.mrb[16].mxu1 }
 0x725   : > { %v1123_v62 = vadd.f32 %v1440_v59, %v1122_v61  ;;  %v1539_v63 = vpop.f32.mrb[17].mxu1 }
 0x726   : > { %v1125_v1 = vpop.f32.mrb[18].mxu1 }
 0x727   : > { %v1540_v2 = vpop.f32.mrb[19].mxu1  ;;  %v1132_v3 = vadd.f32 %v1131_v60, %v1123_v62 }
 0x729   : > { %v1133_v4 = vsel %vm517_vm1, %v1132_v3, 0.0 }
 0x72a   : > { %1134 = vadd.xlane.f32.xlu0 %v1133_v4 }
 0x7b7   : > { %v1135_v5 = vpop.xlane.xlu0 %1134 }
 0x7b8   : > { %v1137_v6 = vmul.f32 0.03125, %v1135_v5 }
 0x7ba   : > { %v1138_v7 = vsub.f32 %v1132_v3, %v1137_v6 }
 0x7bc   : > { %v1139_v8 = vmul.f32 %v1138_v7, %v1138_v7 }
 0x7be   : > { %v1140_v9 = vsel %vm517_vm1, %v1139_v8, 0.0 }
 0x7bf   : > { %1141 = vadd.xlane.f32.xlu1 %v1140_v9 }
 0x7c0   : > { %1953 = shalt.err (!%p1950_p1)
}
 0x7c1   : > { %s1954_s26 = scalar_lea.hbm %s2580_s28, 256  ;;  %s1958_s16 = scalar_lea.hbm %s2715_s15, 512 }
 0x7c2   : > { %p1955_p5 = scmp.ne.s32.totalorder %s2580_s28, %s1954_s26  ;;  %p1959_p11 = scmp.lt.u32.totalorder %s2580_s28, %s2715_s15 }
 0x7c3   : > { %p1960_p6 = scmp.lt.u32.totalorder %s1958_s16, %s1954_s26  ;;  %p1962_p4 = scmp.lt.u32.totalorder %s1954_s26, %s2580_s28 }
 0x7c4   : > { %p1956_p8 = pnand %p1955_p5, %p2716_p9 }
 0x7c5   : > { %p1961_p13 = por %p1960_p6, %p1959_p11 }
 0x7c6   : > { %p1957_p3 = pneg %p1956_p8 }
 0x7c7   : > { %p1963_p0 = por %p1962_p4, %p1961_p13 }
 0x7c9   : > { %p1964_p7 = pnand %p1963_p0, %p1957_p3 }
 0x7cb   : > { %1967 = shalt.err (!%p1964_p7)
}
 0x7cc   : > { %s2097_s24 = smov 4   ;;  %v1444_v14 = vld [vmem:[#allocation16] ss:$0 sm:$0xff]  ;;  %v1445_v16 = vld [vmem:[#allocation17] ss:$0 sm:$0xff]  ;;  %s1448_s27 = sshll.u32 %s2714_s25, 6 }
 0x7cd   : > { %1570 = dma.vmem_to_hbm [thread:$0]  (%p2716_p9), %s2582_s0, 256, %s2580_s28, %s1172_s21, %s2092_s17, %s2092_s17, %s2097_s24  }
 0x7ce   : > { %s480_s8 = scalar_lea.vmem [#allocation19], %s1411_s2  ;;  %s2717_s17 = sld [smem:[#allocation34_spill]] }
 0x7cf   : > { %s1186_s26 = sshll.u32 %s480_s8, 4  ;;  %s1167_s28 = scalar_lea.sflag [#allocation7], %s2447_s3  ;;  %s2618_s26 = int_to_ptr.vmem [resolvable:$true] %s1186_s26 }
 0x7d0   : > { %s1968_s21 = scalar_lea.vmem %s2618_s26, 64  ;;  %s2098_s2 = smov [#allocation19]  }
 0x7d1   : > { %p1969_p12 = scmp.ne.s32.totalorder %s2618_s26, %s1968_s21  ;;  %s1972_s25 = sshll.u32 %s2098_s2, 4  ;;  %s1973_s25 = int_to_ptr.vmem [resolvable:$false] %s1972_s25 }
 0x7d2   : > { %s1974_s16 = scalar_lea.vmem %s1973_s25, 128  ;;  %p1975_p1 = scmp.lt.s32.totalorder %s2618_s26, %s1973_s25 }
 0x7d3   : > { %p1970_p2 = pnand %p1969_p12, %p2716_p9  ;;  %p1976_p5 = scmp.lt.s32.totalorder %s1974_s16, %s1968_s21 }
 0x7d4   : > { %s2616_s0 = scalar_lea.hbm %s2717_s17, %s1448_s27 }
 0x7d5   : > { %p1971_p10 = pneg %p1970_p2  ;;  %p1977_p8 = por %p1976_p5, %p1975_p1 }
 0x7d7   : > { %p1978_p3 = pnand %p1977_p8, %p1971_p10 }
 0x84c   : > { %v1142_v10 = vpop.xlane.xlu1 %1141 }
 0x84d   : > { %v1143_v11 = vmul.f32 0.03125, %v1142_v10 }
 0x84f   : > { %v1144_v12 = vadd.f32 1e-05, %v1143_v11 }
 0x851   : > { %1710 = vrsqrt.f32 %v1144_v12 }
 0x85b   : > { %v1711_v13 = vpop.eup %1710 }
 0x85c   : > { %v1146_v15 = vmul.f32 %v1711_v13, %v1138_v7 }
 0x85e   : > { %v1154_v17 = vmul.f32 %v1444_v14, %v1146_v15 }
 0x860   : > { %v1162_v18 = vadd.f32 %v1445_v16, %v1154_v17 }
 0x862   : > { %v1163_v19 = vpack.c.bf16 %v1162_v18, %v1162_v18 }
 0x864   : > { %1165 = vst.msk [vmem:[%s480_s8] sm:$0xf] %vm562_vm2, %v1163_v19 }
 0x865   : > { %1981 = shalt.err (!%p1978_p3)
}
 0x866   : > { %s1982_s3 = scalar_lea.hbm %s2616_s0, 64  ;;  %s1986_s24 = scalar_lea.hbm %s2717_s17, 128 }
 0x867   : > { %p1983_p11 = scmp.ne.s32.totalorder %s2616_s0, %s1982_s3  ;;  %p1987_p4 = scmp.lt.u32.totalorder %s2616_s0, %s2717_s17 }
 0x868   : > { %p1988_p0 = scmp.lt.u32.totalorder %s1986_s24, %s1982_s3  ;;  %p1990_p12 = scmp.lt.u32.totalorder %s1982_s3, %s2616_s0 }
 0x869   : > { %p1984_p6 = pnand %p1983_p11, %p2716_p9 }
 0x86a   : > { %p1989_p7 = por %p1988_p0, %p1987_p4 }
 0x86b   : > { %p1985_p13 = pneg %p1984_p6 }
 0x86c   : > { %p1991_p2 = por %p1990_p12, %p1989_p7 }
 0x86e   : > { %p1992_p10 = pnand %p1991_p2, %p1985_p13 }
 0x870   : > { %1995 = shalt.err (!%p1992_p10)
}
 0x871   : > { %1569 = dma.vmem_to_hbm [thread:$0]  (%p2716_p9), %s2618_s26, 64, %s2616_s0, %s1167_s28  }
 0x872 PF: > { %s1215_s23 = sand.u32 1, %s2054_s30   ;;  %p2718_p1 = scmp.ne.s32.totalorder %s2700_s18, 0 }
 0x873   : > { %p2719_p5 = scmp.ge.s32.totalorder %s2074_s14, 2  ;;  %s1216_s29 = scalar_lea.sflag [#allocation7], %s1215_s23 }
 0x875   : > { %p1600_p8 = pnand %p2719_p5, %p2718_p1 }
 0x877   : > { %2045 = dma.done.wait (!%p1600_p8), %s1216_s29, 64  }
 0x878   : > { %2047 = vsyncadd (!%p1600_p8), %s1216_s29, 4294967232  ;;  %s1225_s21 = scalar_lea.sflag [#allocation21], %s1215_s23 }
 0x879   : > { %2049 = dma.done.wait (!%p1600_p8), %s1225_s21, 256  }
 0x87a   : > { %2051 = vsyncadd (!%p1600_p8), %s1225_s21, 4294967040  ;;  %s35_s14 = sadd.s32 1, %s2074_s14   ;;  %s2720_s20 = smov %s2727_s12 }
 0x87b   : > { %p32_p3 = scmp.ge.s32.totalorder %s35_s14, 4   ;;  %s2721_s30 = smov %s2058_s10 }
 0x87c   : > { %s2722_s10 = smov %s2062_s11  ;;  %s2723_s11 = smov %s2364_s22 }
 0x87d   : > { %s2724_s12 = smov %s2070_s13  ;;  %s2725_s13 = smov %s2720_s20 }
 0x87e   :  { %34 = sbr.rel (!%p32_p3) target bundleno = 19 (0x13), region = 160 }
 0x885   :  { %1230 = vsyncpa [#allocation6], 1 }
 0x886   :  { %1232 = vsyncpa [#allocation6 + $0x1], 1 }
 0x887   :  { %1233 = vsyncpa [#allocation9], 1 }
 0x888   :  { %1235 = vsyncpa [#allocation9 + $0x1], 1 }
 0x889   :  { %1236 = vsyncpa [#allocation12], 1 }
 0x88a   :  { %1237 = vsyncpa [#allocation15], 1 }
 0x88b   :  { %1238 = vsyncpa [#allocation18], 1 }
 0x88c   :  { %1239 = vsyncpa [#allocation7], 1 }
 0x88d   :  { %1241 = vsyncpa [#allocation7 + $0x1], 1 }
 0x88e   :  { %1242 = vsyncpa [#allocation21], 1 }
 0x88f   :  { %1244 = vsyncpa [#allocation21 + $0x1], 1 }

</bundles_post_ra>
